<compile_context>
chip_gen: v7x
topology: tpu7x:2x2x1
jax: 0.10.0
libtpu: 0.0.40
codegen_flags: <defaults>
</compile_context>

<pallas_src>
import functools

import numpy as np
import jax
import jax.numpy as jnp
from jax.experimental import pallas as pl
from jax.experimental.pallas import tpu as pltpu

KH = KW = 3            # BasicConv2d defaults: kernel 3, stride 1, padding 1
_LEAKY_SLOPE = 0.01    # F.leaky_relu default


def _round_up(v, m):
    return ((v + m - 1) // m) * m


def _vmem_budgets():
    """(per-step tile budget, vmem_limit cap) -- generation aware."""
    cap = 64 * 2**20                       # conservative default (v7x per-core VMEM)
    try:
        info = pltpu.get_tpu_info()
        c = getattr(info, "vmem_capacity_bytes", None)
        if c:
            cap = int(c)
    except Exception:
        pass
    tile_budget = min(int(cap * 0.4), 48 * 2**20)   # big tiles on 128 MiB parts,
                                                    # ~25 MiB (headroom) on v7x
    limit_cap = int(cap * 0.85)                     # never request all of VMEM
    return tile_budget, limit_cap


def _vmem_bytes(th, h, w, cin_p, cout_p, n_groups, n_outputs,
                cbytes, obytes, use_im2col):
    """Rough per-step VMEM footprint (double-buffered BlockSpec streams)."""
    k = KH * KW * cin_p
    n = n_groups * cout_p
    frame = 2 * (h + 2) * (w + 2) * cin_p * cbytes      # frame block (double buffer)
    wgt = 2 * k * n * cbytes                            # resident weight (x2 safety)
    col = th * w * k * cbytes if use_im2col else 0      # im2col scratch
    outs = 2 * n_outputs * th * w * cout_p * obytes     # double-buffered output tiles
    acc = th * w * n * 4                                # f32 matmul result
    temps = th * w * k * cbytes                         # slice/reshape copies (rough)
    return frame + wgt + col + outs + acc + temps


def _pick_row_tile(h, w, cin_p, cout_p, n_groups, n_outputs,
                   cbytes, obytes, use_im2col, requested, budget):
    """Largest divisor of H that fits the budget -> prefers whole-frame tiles
    (maximal MXU M = th*w) and the fewest grid steps."""
    if requested is not None:
        assert h % requested == 0, "row_tile must divide H"
        return requested
    for d in range(h, 0, -1):
        if h % d:
            continue
        if _vmem_bytes(d, h, w, cin_p, cout_p, n_groups, n_outputs,
                       cbytes, obytes, use_im2col) <= budget:
            return d
    # TODO(synk): frames whose padded slab alone exceeds the VMEM budget would
    # need a manually double-buffered halo DMA (pl.ANY input); not needed for
    # GaitGL-scale frames.
    return 1


def _make_conv3x3_kernel(th, w, cin_p, cout_p, n_groups, n_outputs,
                         neg_slope, use_im2col, mode):
    """3x3 / stride-1 / pad-1 conv(s) for one (frame, row-tile) grid step, NHWC.

    refs: x_ref (H+2, W+2, Cin_p) padded frame (resident per frame),
          w_ref (9*Cin_p, n_groups*Cout_p) folded weight(s),
          out_refs[i] (TH, W, Cout_p) lane-dense output tile(s),
          [col_ref (TH, W, 9*Cin_p) im2col scratch when Cin_p < 128].
    """
    k = KH * KW * cin_p
    n = n_groups * cout_p

    def kernel(*refs):
        x_ref, w_ref = refs[0], refs[1]
        out_refs = refs[2:2 + n_outputs]
        col_ref = refs[2 + n_outputs] if use_im2col else None

        ii = pl.program_id(1)
        row0 = pl.multiple_of(ii * th, th)

        if use_im2col:
            # Small Cin: pack the 9 taps into one K = 9*Cin_p buffer so the
            # whole tile is a single MXU matmul.  Every strip is overwritten
            # each step, so no init is needed.
            for dh in range(KH):
                for dw in range(KW):
                    tap = dh * KW + dw
                    col_ref[:, :, tap * cin_p:(tap + 1) * cin_p] = \
                        x_ref[pl.ds(row0 + dh, th), pl.ds(dw, w), :]
            acc = jnp.dot(col_ref[...].reshape(th * w, k), w_ref[...],
                          preferred_element_type=jnp.float32)
        else:
            # Wide channels (Cin_p >= 128): each tap already has a full-K
            # contraction, so skip the materialised im2col and accumulate 9
            # per-tap dots straight from the resident frame block.
            acc = jnp.zeros((th * w, n), jnp.float32)
            for dh in range(KH):
                for dw in range(KW):
                    tap = dh * KW + dw
                    xs = x_ref[pl.ds(row0 + dh, th), pl.ds(dw, w), :]
                    acc = acc + jnp.dot(
                        xs.reshape(th * w, cin_p),
                        w_ref[tap * cin_p:(tap + 1) * cin_p, :],
                        preferred_element_type=jnp.float32)

        def leaky(v):
            return jnp.where(v >= 0, v, neg_slope * v)

        if mode == "conv":                 # BasicConv2d: raw conv
            out_refs[0][...] = acc.reshape(th, w, cout_p).astype(out_refs[0].dtype)
        elif mode == "fused_sum":          # GLConv fm_sign=False
            res = leaky(acc[:, :cout_p]) + leaky(acc[:, cout_p:])
            out_refs[0][...] = res.reshape(th, w, cout_p).astype(out_refs[0].dtype)
        else:                              # GLConv fm_sign=True: two leaky outputs
            out_refs[0][...] = leaky(acc[:, :cout_p]).reshape(th, w, cout_p) \
                .astype(out_refs[0].dtype)
            out_refs[1][...] = leaky(acc[:, cout_p:]).reshape(th, w, cout_p) \
                .astype(out_refs[1].dtype)

    return kernel


def _conv3x3(x_nhwc, weights, *, mode, compute_dtype=jnp.bfloat16,
             out_dtype=jnp.float32, row_tile=None, neg_slope=_LEAKY_SLOPE):
    """Fused 3x3 same-conv(s).  NHWC in, (B, H, W, Cout_pad) out.

    mode: 'conv'       -> 1 weight, raw conv output
          'fused_sum'  -> 2 weights, leaky(conv0) + leaky(conv1)  (one output)
          'fused_pair' -> 2 weights, (leaky(conv0), leaky(conv1)) (two outputs)
    """
    assert mode in ("conv", "fused_sum", "fused_pair")
    n_groups = len(weights)
    assert n_groups == (1 if mode == "conv" else 2)
    n_outputs = 2 if mode == "fused_pair" else 1

    b, h, w, cin = x_nhwc.shape
    cout = weights[0].shape[0]
    cin_p = _round_up(cin, 8)        # pad channels so tap strips cover full K
    cout_p = _round_up(cout, 128)    # lane-dense output stores
    k = KH * KW * cin_p
    n = n_groups * cout_p
    use_im2col = cin_p < 128
    cbytes = np.dtype(compute_dtype).itemsize
    obytes = np.dtype(out_dtype).itemsize

    tile_budget, limit_cap = _vmem_budgets()
    th = _pick_row_tile(h, w, cin_p, cout_p, n_groups, n_outputs,
                        cbytes, obytes, use_im2col, row_tile, tile_budget)
    nh = h // th

    # Input: spatial pad by 1, channel pad to Cin_p, cast to compute dtype.
    xp = jnp.pad(x_nhwc, ((0, 0), (1, 1), (1, 1), (0, cin_p - cin)))
    xp = xp.astype(compute_dtype)

    # Weights: OIHW -> (kh, kw, Cin_p, Cout_p) -> (9*Cin_p, Cout_p); the
    # global/local weights are concatenated along N so one matmul does both.
    def fold(wt):
        wt = jnp.transpose(wt, (2, 3, 1, 0))
        wt = jnp.pad(wt, ((0, 0), (0, 0), (0, cin_p - cin), (0, cout_p - cout)))
        return wt.reshape(k, cout_p)

    parts = [fold(wt) for wt in weights]
    wmat = parts[0] if n_groups == 1 else jnp.concatenate(parts, axis=1)
    wmat = wmat.astype(compute_dtype)

    in_specs = [
        # Whole padded frame, auto-pipelined; block index only changes with the
        # batch axis so the HBM->VMEM DMA is issued once per frame and hidden.
        pl.BlockSpec((None, h + 2, w + 2, cin_p), lambda bb, ii: (bb, 0, 0, 0)),
        # Folded weight(s): resident (constant block index).
        pl.BlockSpec((k, n), lambda bb, ii: (0, 0)),
    ]
    out_spec = pl.BlockSpec((None, th, w, cout_p), lambda bb, ii: (bb, ii, 0, 0))
    one_out = jax.ShapeDtypeStruct((b, h, w, cout_p), out_dtype)
    if n_outputs == 1:
        out_specs, out_shape = out_spec, one_out
    else:
        out_specs, out_shape = [out_spec, out_spec], (one_out, one_out)

    scratch = [pltpu.VMEM((th, w, k), compute_dtype)] if use_im2col else []

    est = _vmem_bytes(th, h, w, cin_p, cout_p, n_groups, n_outputs,
                      cbytes, obytes, use_im2col)
    vmem_limit = int(min(limit_cap, max(32 * 2**20, int(1.5 * est))))

    flops = 2 * b * h * w * (KH * KW * cin) * (n_groups * cout)
    bytes_accessed = (xp.size * cbytes + wmat.size * cbytes
                      + n_outputs * b * h * w * cout_p * obytes)
    cost = pl.CostEstimate(flops=flops, transcendentals=0,
                           bytes_accessed=bytes_accessed)

    kernel = _make_conv3x3_kernel(th, w, cin_p, cout_p, n_groups, n_outputs,
                                  neg_slope, use_im2col, mode)

    return pl.pallas_call(
        kernel,
        out_shape=out_shape,
        grid_spec=pltpu.PrefetchScalarGridSpec(
            num_scalar_prefetch=0,
            grid=(b, nh),          # frames outer -> megacore shards by frame,
            in_specs=in_specs,     # row tiles inner -> frame block stays resident
            out_specs=out_specs,
            scratch_shapes=scratch),
        compiler_params=pltpu.CompilerParams(
            dimension_semantics=("parallel", "parallel"),
            vmem_limit_bytes=vmem_limit),
        cost_estimate=cost,
    )(xp, wmat)


def basic_conv2d(x_nchw, weight_oihw, *, compute_dtype=jnp.bfloat16,
                 out_dtype=jnp.float32, row_tile=None):
    """BasicConv2d.forward: 3x3 conv, stride 1, pad 1, bias=False (NCHW in/out)."""
    cout = weight_oihw.shape[0]
    x_nhwc = jnp.transpose(x_nchw, (0, 2, 3, 1))
    out_p = _conv3x3(x_nhwc, (weight_oihw,), mode="conv",
                     compute_dtype=compute_dtype, out_dtype=out_dtype,
                     row_tile=row_tile)
    return jnp.transpose(out_p[..., :cout], (0, 3, 1, 2))


def glconv_forward_frames(x_frames_nhwc, w_global, w_local, *, fm_sign=False,
                          compute_dtype=jnp.bfloat16, out_dtype=jnp.float32,
                          row_tile=None, neg_slope=_LEAKY_SLOPE):
    """Channels-last GLConv core on frames-folded input (n*s, h, w, c).

    Returns padded-Cout NHWC so chained GaitGL blocks can stay channels-last
    (transpose/slice only at model boundaries).  fm_sign=False -> one array
    leaky(global)+leaky(local); fm_sign=True -> (leaky(global), leaky(local)).
    """
    mode = "fused_pair" if fm_sign else "fused_sum"
    return _conv3x3(x_frames_nhwc, (w_global, w_local), mode=mode,
                    compute_dtype=compute_dtype, out_dtype=out_dtype,
                    row_tile=row_tile, neg_slope=neg_slope)


def glconv_forward(x, w_global, w_local, *, halving=0, fm_sign=False,
                   compute_dtype=jnp.bfloat16, out_dtype=jnp.float32,
                   row_tile=None, neg_slope=_LEAKY_SLOPE):
    """GLConv.forward.  x: [n, c, s, h, w] -> [n, cout, s, h, w] (fm_sign=False)
    or [n, cout, 2s, h, w] (fm_sign=True)."""
    n, c, s, h, w = x.shape
    cout = w_global.shape[0]

    if halving != 0:
        # TODO(synk): the halving>0 squeeze-excitation branch of the reference
        # (AdaptiveAvgPool3d + Linear over a .view that only works when c==1,
        # nn.Conv2d applied to 5-D input, .cpu()/print debug round-trip) does
        # not execute as written in PyTorch, so it is not reproduced here.
        raise NotImplementedError("GLConv halving>0 branch is not implemented")

    # Single layout pass: fold frames into batch, go channels-last (NHWC).
    x_frames = jnp.transpose(x, (0, 2, 3, 4, 1)).reshape(n * s, h, w, c)

    if not fm_sign:
        feat_p = glconv_forward_frames(x_frames, w_global, w_local,
                                       fm_sign=False, compute_dtype=compute_dtype,
                                       out_dtype=out_dtype, row_tile=row_tile,
                                       neg_slope=neg_slope)
        feat = feat_p[..., :cout].reshape(n, s, h, w, cout)
        return jnp.transpose(feat, (0, 4, 1, 2, 3))            # (n, cout, s, h, w)

    gob_p, lcl_p = glconv_forward_frames(x_frames, w_global, w_local,
                                         fm_sign=True, compute_dtype=compute_dtype,
                                         out_dtype=out_dtype, row_tile=row_tile,
                                         neg_slope=neg_slope)
    gob = gob_p[..., :cout].reshape(n, s, h, w, cout)
    lcl = lcl_p[..., :cout].reshape(n, s, h, w, cout)
    cat = jnp.concatenate([gob, lcl], axis=1)                  # torch cat dim=2 (s)
    return jnp.transpose(cat, (0, 4, 1, 2, 3))                 # (n, cout, 2s, h, w)


# ------------------------- pure-JAX references -------------------------------

def _conv_ref(x4_nchw, wt):
    return jax.lax.conv_general_dilated(
        x4_nchw, wt, window_strides=(1, 1), padding=((1, 1), (1, 1)),
        dimension_numbers=("NCHW", "OIHW", "NCHW"),
        precision=jax.lax.Precision.HIGHEST)


def _leaky_ref(v, neg_slope=_LEAKY_SLOPE):
    return jnp.where(v >= 0, v, neg_slope * v)


def _reference_glconv(x, w_global, w_local, *, fm_sign=False,
                      neg_slope=_LEAKY_SLOPE):
    n, c, s, h, w = x.shape
    cout = w_global.shape[0]
    x4 = jnp.transpose(x, (0, 2, 1, 3, 4)).reshape(n * s, c, h, w)
    gob = _conv_ref(x4, w_global).reshape(n, s, cout, h, w)
    lcl = _conv_ref(x4, w_local).reshape(n, s, cout, h, w)
    if not fm_sign:
        feat = _leaky_ref(gob, neg_slope) + _leaky_ref(lcl, neg_slope)
        return jnp.transpose(feat, (0, 2, 1, 3, 4))            # (n, cout, s, h, w)
    feat = _leaky_ref(jnp.concatenate([gob, lcl], axis=1), neg_slope)
    return jnp.transpose(feat, (0, 2, 1, 3, 4))                # (n, cout, 2s, h, w)


if __name__ == "__main__":
    N, C, S, H, W, COUT = 2, 4, 4, 16, 16, 8
    key = jax.random.PRNGKey(0)
    kx, kg, kl, kw2 = jax.random.split(key, 4)
    x = jax.random.normal(kx, (N, C, S, H, W), dtype=jnp.float32)
    w_global = jax.random.normal(kg, (COUT, C, KH, KW), dtype=jnp.float32) * 0.1
    w_local = jax.random.normal(kl, (COUT, C, KH, KW), dtype=jnp.float32) * 0.1

    # 1) f32 operands, explicit row tiling (2 halo'd row tiles per frame).
    fwd_f32 = jax.jit(functools.partial(glconv_forward,
                                        compute_dtype=jnp.float32, row_tile=8))
    out_f32 = jax.block_until_ready(fwd_f32(x, w_global, w_local))
    ref_f32 = _reference_glconv(x, w_global, w_local)
    assert out_f32.shape == (N, COUT, S, H, W)
    assert jnp.allclose(out_f32, ref_f32, atol=2e-2, rtol=2e-2), \
        float(jnp.max(jnp.abs(out_f32 - ref_f32)))

    # 2) bf16 operands (default, MXU-native), f32 accumulation, auto row tile.
    fwd_bf16 = jax.jit(glconv_forward)
    out_bf16 = jax.block_until_ready(fwd_bf16(x, w_global, w_local))
    rnd = lambda a: a.astype(jnp.bfloat16).astype(jnp.float32)
    ref_bf16 = _reference_glconv(rnd(x), rnd(w_global), rnd(w_local))
    assert jnp.allclose(out_bf16, ref_bf16, atol=2e-3, rtol=2e-3), \
        float(jnp.max(jnp.abs(out_bf16 - ref_bf16)))

    # 3) fm_sign=True path (two leaky outputs from the shared matmul).
    fwd_sign = jax.jit(functools.partial(glconv_forward, fm_sign=True,
                                         compute_dtype=jnp.float32))
    out_sign = jax.block_until_ready(fwd_sign(x, w_global, w_local))
    ref_sign = _reference_glconv(x, w_global, w_local, fm_sign=True)
    assert out_sign.shape == (N, COUT, 2 * S, H, W)
    assert jnp.allclose(out_sign, ref_sign, atol=2e-2, rtol=2e-2), \
        float(jnp.max(jnp.abs(out_sign - ref_sign)))

    # 4) BasicConv2d on its own (NCHW in/out), f32 operands.
    x4 = jnp.transpose(x, (0, 2, 1, 3, 4)).reshape(N * S, C, H, W)
    out_bc = jax.block_until_ready(
        basic_conv2d(x4, w_global, compute_dtype=jnp.float32))
    ref_bc = _conv_ref(x4, w_global)
    assert jnp.allclose(out_bc, ref_bc, atol=2e-2, rtol=2e-2), \
        float(jnp.max(jnp.abs(out_bc - ref_bc)))

    # 5) Wide-channel layer (Cin_p >= 128): exercises the no-im2col per-tap path.
    B2, C2, H2, W2, CO2 = 2, 128, 8, 16, 16
    kk = jax.random.split(kw2, 2)
    xw = jax.random.normal(kk[0], (B2, C2, H2, W2), dtype=jnp.float32)
    ww = jax.random.normal(kk[1], (CO2, C2, KH, KW), dtype=jnp.float32) * 0.05
    out_w = jax.block_until_ready(basic_conv2d(xw, ww))        # bf16 compute default
    ref_w = _conv_ref(rnd(xw), rnd(ww))
    assert jnp.allclose(out_w, ref_w, atol=5e-3, rtol=5e-3), \
        float(jnp.max(jnp.abs(out_w - ref_w)))

    print("KERNEL_OK")
</pallas_src>

<mosaic_0001>
module attributes {stable_mosaic.version = 11 : i64} {
  func.func @kernel(%arg0: i32, %arg1: i32, %arg2: memref<1x18x18x8xf32, #tpu.memory_space<vmem>>, %arg3: memref<72x256xf32, #tpu.memory_space<vmem>>, %arg4: memref<1x8x16x128xf32, #tpu.memory_space<vmem>>, %arg5: memref<8x16x72xf32, #tpu.memory_space<vmem>>) attributes {dimension_semantics = [#tpu.dimension_semantics<parallel>, #tpu.dimension_semantics<parallel>], iteration_bounds = array<i64: 8, 2>, scalar_prefetch = 0 : i64, scratch_operands = 1 : i64, tpu.core_type = #tpu.core_type<tc>, window_params = [{transform_indices = @transform_0, window_bounds = array<i64: 1, 18, 18, 8>}, {pipeline_mode = #tpu.pipeline_mode<synchronous>, transform_indices = @transform_1, window_bounds = array<i64: 72, 256>}, {transform_indices = @transform_2, window_bounds = array<i64: 1, 8, 16, 128>}]} {
    %c8_i32 = arith.constant 8 : i32
    %0 = arith.muli %arg1, %c8_i32 : i32
    %1 = tpu.assume_multiple %0, 8 : i32
    %c0_i32 = arith.constant 0 : i32
    %2 = arith.addi %1, %c0_i32 : i32
    %c0 = arith.constant 0 : index
    %3 = arith.index_cast %2 : i32 to index
    %c0_0 = arith.constant 0 : index
    %c0_1 = arith.constant 0 : index
    %4 = vector.load %arg2[%c0, %3, %c0_0, %c0_1] : memref<1x18x18x8xf32, #tpu.memory_space<vmem>>, vector<1x8x16x8xf32>
    %5 = vector.shape_cast %4 : vector<1x8x16x8xf32> to vector<8x16x8xf32>
    %c0_2 = arith.constant 0 : index
    %c0_3 = arith.constant 0 : index
    %c0_4 = arith.constant 0 : index
    %6 = vector.load %arg5[%c0_2, %c0_3, %c0_4] : memref<8x16x72xf32, #tpu.memory_space<vmem>>, vector<8x16x8xf32>
    tpu.vector_store %arg5[%c0_2, %c0_3, %c0_4], %5 {strides = array<i32>} : memref<8x16x72xf32, #tpu.memory_space<vmem>>, vector<8x16x8xf32>,
    %c0_i32_5 = arith.constant 0 : i32
    %7 = arith.addi %1, %c0_i32_5 : i32
    %c0_6 = arith.constant 0 : index
    %8 = arith.index_cast %7 : i32 to index
    %c1 = arith.constant 1 : index
    %c0_7 = arith.constant 0 : index
    %9 = vector.load %arg2[%c0_6, %8, %c1, %c0_7] : memref<1x18x18x8xf32, #tpu.memory_space<vmem>>, vector<1x8x16x8xf32>
    %10 = vector.shape_cast %9 : vector<1x8x16x8xf32> to vector<8x16x8xf32>
    %c0_8 = arith.constant 0 : index
    %c0_9 = arith.constant 0 : index
    %c8 = arith.constant 8 : index
    %11 = vector.load %arg5[%c0_8, %c0_9, %c8] : memref<8x16x72xf32, #tpu.memory_space<vmem>>, vector<8x16x8xf32>
    tpu.vector_store %arg5[%c0_8, %c0_9, %c8], %10 {strides = array<i32>} : memref<8x16x72xf32, #tpu.memory_space<vmem>>, vector<8x16x8xf32>,
    %c0_i32_10 = arith.constant 0 : i32
    %12 = arith.addi %1, %c0_i32_10 : i32
    %c0_11 = arith.constant 0 : index
    %13 = arith.index_cast %12 : i32 to index
    %c2 = arith.constant 2 : index
    %c0_12 = arith.constant 0 : index
    %14 = vector.load %arg2[%c0_11, %13, %c2, %c0_12] : memref<1x18x18x8xf32, #tpu.memory_space<vmem>>, vector<1x8x16x8xf32>
    %15 = vector.shape_cast %14 : vector<1x8x16x8xf32> to vector<8x16x8xf32>
    %c0_13 = arith.constant 0 : index
    %c0_14 = arith.constant 0 : index
    %c16 = arith.constant 16 : index
    %16 = vector.load %arg5[%c0_13, %c0_14, %c16] : memref<8x16x72xf32, #tpu.memory_space<vmem>>, vector<8x16x8xf32>
    tpu.vector_store %arg5[%c0_13, %c0_14, %c16], %15 {strides = array<i32>} : memref<8x16x72xf32, #tpu.memory_space<vmem>>, vector<8x16x8xf32>,
    %c1_i32 = arith.constant 1 : i32
    %17 = arith.addi %1, %c1_i32 : i32
    %c0_15 = arith.constant 0 : index
    %18 = arith.index_cast %17 : i32 to index
    %c0_16 = arith.constant 0 : index
    %c0_17 = arith.constant 0 : index
    %19 = vector.load %arg2[%c0_15, %18, %c0_16, %c0_17] : memref<1x18x18x8xf32, #tpu.memory_space<vmem>>, vector<1x8x16x8xf32>
    %20 = vector.shape_cast %19 : vector<1x8x16x8xf32> to vector<8x16x8xf32>
    %c0_18 = arith.constant 0 : index
    %c0_19 = arith.constant 0 : index
    %c24 = arith.constant 24 : index
    %21 = vector.load %arg5[%c0_18, %c0_19, %c24] : memref<8x16x72xf32, #tpu.memory_space<vmem>>, vector<8x16x8xf32>
    tpu.vector_store %arg5[%c0_18, %c0_19, %c24], %20 {strides = array<i32>} : memref<8x16x72xf32, #tpu.memory_space<vmem>>, vector<8x16x8xf32>,
    %c1_i32_20 = arith.constant 1 : i32
    %22 = arith.addi %1, %c1_i32_20 : i32
    %c0_21 = arith.constant 0 : index
    %23 = arith.index_cast %22 : i32 to index
    %c1_22 = arith.constant 1 : index
    %c0_23 = arith.constant 0 : index
    %24 = vector.load %arg2[%c0_21, %23, %c1_22, %c0_23] : memref<1x18x18x8xf32, #tpu.memory_space<vmem>>, vector<1x8x16x8xf32>
    %25 = vector.shape_cast %24 : vector<1x8x16x8xf32> to vector<8x16x8xf32>
    %c0_24 = arith.constant 0 : index
    %c0_25 = arith.constant 0 : index
    %c32 = arith.constant 32 : index
    %26 = vector.load %arg5[%c0_24, %c0_25, %c32] : memref<8x16x72xf32, #tpu.memory_space<vmem>>, vector<8x16x8xf32>
    tpu.vector_store %arg5[%c0_24, %c0_25, %c32], %25 {strides = array<i32>} : memref<8x16x72xf32, #tpu.memory_space<vmem>>, vector<8x16x8xf32>,
    %c1_i32_26 = arith.constant 1 : i32
    %27 = arith.addi %1, %c1_i32_26 : i32
    %c0_27 = arith.constant 0 : index
    %28 = arith.index_cast %27 : i32 to index
    %c2_28 = arith.constant 2 : index
    %c0_29 = arith.constant 0 : index
    %29 = vector.load %arg2[%c0_27, %28, %c2_28, %c0_29] : memref<1x18x18x8xf32, #tpu.memory_space<vmem>>, vector<1x8x16x8xf32>
    %30 = vector.shape_cast %29 : vector<1x8x16x8xf32> to vector<8x16x8xf32>
    %c0_30 = arith.constant 0 : index
    %c0_31 = arith.constant 0 : index
    %c40 = arith.constant 40 : index
    %31 = vector.load %arg5[%c0_30, %c0_31, %c40] : memref<8x16x72xf32, #tpu.memory_space<vmem>>, vector<8x16x8xf32>
    tpu.vector_store %arg5[%c0_30, %c0_31, %c40], %30 {strides = array<i32>} : memref<8x16x72xf32, #tpu.memory_space<vmem>>, vector<8x16x8xf32>,
    %c2_i32 = arith.constant 2 : i32
    %32 = arith.addi %1, %c2_i32 : i32
    %c0_32 = arith.constant 0 : index
    %33 = arith.index_cast %32 : i32 to index
    %c0_33 = arith.constant 0 : index
    %c0_34 = arith.constant 0 : index
    %34 = vector.load %arg2[%c0_32, %33, %c0_33, %c0_34] : memref<1x18x18x8xf32, #tpu.memory_space<vmem>>, vector<1x8x16x8xf32>
    %35 = vector.shape_cast %34 : vector<1x8x16x8xf32> to vector<8x16x8xf32>
    %c0_35 = arith.constant 0 : index
    %c0_36 = arith.constant 0 : index
    %c48 = arith.constant 48 : index
    %36 = vector.load %arg5[%c0_35, %c0_36, %c48] : memref<8x16x72xf32, #tpu.memory_space<vmem>>, vector<8x16x8xf32>
    tpu.vector_store %arg5[%c0_35, %c0_36, %c48], %35 {strides = array<i32>} : memref<8x16x72xf32, #tpu.memory_space<vmem>>, vector<8x16x8xf32>,
    %c2_i32_37 = arith.constant 2 : i32
    %37 = arith.addi %1, %c2_i32_37 : i32
    %c0_38 = arith.constant 0 : index
    %38 = arith.index_cast %37 : i32 to index
    %c1_39 = arith.constant 1 : index
    %c0_40 = arith.constant 0 : index
    %39 = vector.load %arg2[%c0_38, %38, %c1_39, %c0_40] : memref<1x18x18x8xf32, #tpu.memory_space<vmem>>, vector<1x8x16x8xf32>
    %40 = vector.shape_cast %39 : vector<1x8x16x8xf32> to vector<8x16x8xf32>
    %c0_41 = arith.constant 0 : index
    %c0_42 = arith.constant 0 : index
    %c56 = arith.constant 56 : index
    %41 = vector.load %arg5[%c0_41, %c0_42, %c56] : memref<8x16x72xf32, #tpu.memory_space<vmem>>, vector<8x16x8xf32>
    tpu.vector_store %arg5[%c0_41, %c0_42, %c56], %40 {strides = array<i32>} : memref<8x16x72xf32, #tpu.memory_space<vmem>>, vector<8x16x8xf32>,
    %c2_i32_43 = arith.constant 2 : i32
    %42 = arith.addi %1, %c2_i32_43 : i32
    %c0_44 = arith.constant 0 : index
    %43 = arith.index_cast %42 : i32 to index
    %c2_45 = arith.constant 2 : index
    %c0_46 = arith.constant 0 : index
    %44 = vector.load %arg2[%c0_44, %43, %c2_45, %c0_46] : memref<1x18x18x8xf32, #tpu.memory_space<vmem>>, vector<1x8x16x8xf32>
    %45 = vector.shape_cast %44 : vector<1x8x16x8xf32> to vector<8x16x8xf32>
    %c0_47 = arith.constant 0 : index
    %c0_48 = arith.constant 0 : index
    %c64 = arith.constant 64 : index
    %46 = vector.load %arg5[%c0_47, %c0_48, %c64] : memref<8x16x72xf32, #tpu.memory_space<vmem>>, vector<8x16x8xf32>
    tpu.vector_store %arg5[%c0_47, %c0_48, %c64], %45 {strides = array<i32>} : memref<8x16x72xf32, #tpu.memory_space<vmem>>, vector<8x16x8xf32>,
    %c0_49 = arith.constant 0 : index
    %c0_50 = arith.constant 0 : index
    %c0_51 = arith.constant 0 : index
    %47 = vector.load %arg5[%c0_49, %c0_50, %c0_51] : memref<8x16x72xf32, #tpu.memory_space<vmem>>, vector<8x16x72xf32>
    %48 = vector.shape_cast %47 : vector<8x16x72xf32> to vector<128x72xf32>
    %c0_52 = arith.constant 0 : index
    %c0_53 = arith.constant 0 : index
    %49 = vector.load %arg3[%c0_52, %c0_53] : memref<72x256xf32, #tpu.memory_space<vmem>>, vector<72x256xf32>
    %cst = arith.constant dense<0.000000e+00> : vector<128x256xf32>
    %50 = tpu.matmul %48, %49, %cst {dimension_numbers = #tpu.dot_dimension_numbers<[1], [0], [0], [1], [0, 0, 1, 1], [], []>} : vector<128x72xf32>, vector<72x256xf32>, vector<128x256xf32> -> vector<128x256xf32>
    %51 = vector.extract_strided_slice %50 {offsets = [0, 0], sizes = [128, 128], strides = [1, 1]} : vector<128x256xf32> to vector<128x128xf32>
    %cst_54 = arith.constant 0.000000e+00 : f32
    %52 = vector.broadcast %cst_54 : f32 to vector<128x128xf32>
    %53 = arith.cmpf oge, %51, %52 : vector<128x128xf32>
    %cst_55 = arith.constant 0.00999999977 : f32
    %54 = vector.broadcast %cst_55 : f32 to vector<128x128xf32>
    %55 = arith.mulf %54, %51 : vector<128x128xf32>
    %56 = arith.select %53, %51, %55 : vector<128x128xi1>, vector<128x128xf32>
    %57 = vector.extract_strided_slice %50 {offsets = [0, 128], sizes = [128, 128], strides = [1, 1]} : vector<128x256xf32> to vector<128x128xf32>
    %cst_56 = arith.constant 0.000000e+00 : f32
    %58 = vector.broadcast %cst_56 : f32 to vector<128x128xf32>
    %59 = arith.cmpf oge, %57, %58 : vector<128x128xf32>
    %cst_57 = arith.constant 0.00999999977 : f32
    %60 = vector.broadcast %cst_57 : f32 to vector<128x128xf32>
    %61 = arith.mulf %60, %57 : vector<128x128xf32>
    %62 = arith.select %59, %57, %61 : vector<128x128xi1>, vector<128x128xf32>
    %63 = arith.addf %56, %62 : vector<128x128xf32>
    %64 = vector.shape_cast %63 : vector<128x128xf32> to vector<8x16x128xf32>
    %c0_58 = arith.constant 0 : index
    %c0_59 = arith.constant 0 : index
    %c0_60 = arith.constant 0 : index
    %c0_61 = arith.constant 0 : index
    %65 = vector.load %arg4[%c0_58, %c0_59, %c0_60, %c0_61] : memref<1x8x16x128xf32, #tpu.memory_space<vmem>>, vector<1x8x16x128xf32>
    %66 = vector.shape_cast %65 : vector<1x8x16x128xf32> to vector<8x16x128xf32>
    %67 = vector.shape_cast %64 : vector<8x16x128xf32> to vector<1x8x16x128xf32>
    tpu.vector_store %arg4[%c0_58, %c0_59, %c0_60, %c0_61], %67 {strides = array<i32>} : memref<1x8x16x128xf32, #tpu.memory_space<vmem>>, vector<1x8x16x128xf32>,
    return
  }
  func.func @transform_0(%arg0: i32, %arg1: i32) -> (i32, i32, i32, i32) {
    %c0_i32 = arith.constant 0 : i32
    %c0_i32_0 = arith.constant 0 : i32
    %c0_i32_1 = arith.constant 0 : i32
    %c0_i32_2 = arith.constant 0 : i32
    return %arg0, %c0_i32, %c0_i32_0, %c0_i32_1 : i32, i32, i32, i32
  }
  func.func @transform_1(%arg0: i32, %arg1: i32) -> (i32, i32) {
    %c0_i32 = arith.constant 0 : i32
    %c0_i32_0 = arith.constant 0 : i32
    %c0_i32_1 = arith.constant 0 : i32
    return %c0_i32, %c0_i32_0 : i32, i32
  }
  func.func @transform_2(%arg0: i32, %arg1: i32) -> (i32, i32, i32, i32) {
    %c0_i32 = arith.constant 0 : i32
    %c0_i32_0 = arith.constant 0 : i32
    %c0_i32_1 = arith.constant 0 : i32
    return %arg0, %arg1, %c0_i32, %c0_i32_0 : i32, i32, i32, i32
  }
}

</mosaic_0001>

<bundles_post_ra>
// kernel: glconv_forward.1
= control target key start
LH: loop header
LB: loop body
LE: loop exit
PB: predicated region body
PF: predicated region fallthrough
CT: control target
= control target key end

     0   :  { %s1729_s9 = smov 0   ;;  %s1731_s10 = smov 0   ;;  %s2432_s0 = inlined_call_operand.vmem [shape: f32[8,18,18,8], index: 0, kind: input, shape index: {}]   ;;  %s2433_s1 = inlined_call_operand.vmem [shape: f32[72,256], index: 1, kind: input, shape index: {}]   ;;  %s2434_s2 = inlined_call_operand.vmem [shape: f32[8,16,16,128], index: 2, kind: output, shape index: {}]  }
   0x1   :  { %s1733_s11 = smov 0   ;;  %s1735_s12 = smov 0  }
   0x2   :  { %s1737_s13 = smov 0  }
   0x3 LB: > { %s21_s14 = sadd.s32 1, %s1695_s11  ;;  %s24_s15 = sadd.s32 1, %s1699_s12  ;;  %s1703_s13 = sphi %s1737_s13, %s12_s13   ;;  %s1699_s12 = sphi %s1735_s12, %s2438_s12   ;;  %s1695_s11 = sphi %s1733_s11, %s2437_s11   ;;  %s1691_s10 = sphi %s1731_s10, %s2436_s10   ;;  %s1687_s9 = sphi %s1729_s9, %s2435_s9  }
   0x4   : > { %p22_p0 = scmp.ge.s32.totalorder %s21_s14, 2  ;;  %p1463_p1 = scmp.ge.s32.totalorder %s1703_s13, 1 }
   0x5   : > { %p126_p2 = scmp.lt.s32.totalorder %s1703_s13, 17 }
   0x6   : > { %s2440_s14 = smov (%p22_p0, %s21_s14), 0  ;;  %s2442_s15 = smov (!%p22_p0, %s24_s15), %s1699_s12 }
   0x7   : > { %p127_p3 = pnand %p1463_p1, %p126_p2  ;;  %p26_p4 = scmp.ge.s32.totalorder %s2442_s15, 8 }
   0x8   : > { %p153_p5 = scmp.lt.s32.totalorder (!%p127_p3), %s1691_s10, 7  ;;  %s1470_s16 = smul.u32 (!%p127_p3), 192, %s1687_s9  ;;  %vm188_vm0 = vcmask (!%p127_p3), 64512   ;;  %v1004_v26 = vld [vmem:[%s2433_s1 + $0x8] sm:$0xff] (!%p127_p3)  ;;  %v1006_v27 = vld [vmem:[%s2433_s1 + $0x18] sm:$0xff] (!%p127_p3)  ;;  %v1003_v29 = vld [vmem:[%s2433_s1] sm:$0xff] (!%p127_p3) }
   0x9   : > { %s2444_s15 = smov (%p26_p4, %s2442_s15), 0  ;;  %130 = sbr.rel (%p127_p3) target bundleno = 617 (0x269), region = 28 }
   0xa   : > { %s1705_s22 = smov (!%p127_p3), 16   ;;  %s1706_s23 = smov (!%p127_p3), 8   ;;  %v1589_v28 = vpack.c.bf16 (!%p127_p3), %v1006_v27, %v1004_v26  ;;  %v1005_v30 = vld [vmem:[%s2433_s1 + $0x10] sm:$0xff] (!%p127_p3)  ;;  %v1008_v34 = vld [vmem:[%s2433_s1 + $0x28] sm:$0xff] (!%p127_p3)  ;;  %v1010_v35 = vld [vmem:[%s2433_s1 + $0x38] sm:$0xff] (!%p127_p3)  ;;  %v1712_v58 = vmov (!%p127_p3), 0.0  }
   0xb   : > { %s1707_s24 = smov (!%p127_p3), 24   ;;  %s1708_s25 = smov (!%p127_p3), 32   ;;  %v1591_v31 = vpack.c.bf16 (!%p127_p3), %v1005_v30, %v1003_v29  ;;  %v1593_v36 = vpack.c.bf16 (!%p127_p3), %v1010_v35, %v1008_v34  ;;  %v1007_v37 = vld [vmem:[%s2433_s1 + $0x20] sm:$0xff] (!%p127_p3)  ;;  %v1009_v38 = vld [vmem:[%s2433_s1 + $0x30] sm:$0xff] (!%p127_p3)  ;;  %v1012_v40 = vld [vmem:[%s2433_s1 + $0x48] sm:$0xff] (!%p127_p3)  ;;  %1134 = vmatprep.mubr.f32.mxu0 (!%p127_p3), %v1712_v58  ;;  %1182 = vmatprep.mubr.f32.mxu1 (!%p127_p3), %v1712_v58  ;;  %vm285_vm1 = vcmask (!%p127_p3), 130112  }
   0xc   : > { %s1709_s6 = smov (!%p127_p3), 40   ;;  %1590 = vmatprep.subr.bf16.mxu0 (!%p127_p3), %v1589_v28  ;;  %1605 = vmatprep.subr.bf16.mxu1 (!%p127_p3), %v1589_v28  ;;  %v1595_v39 = vpack.c.bf16 (!%p127_p3), %v1009_v38, %v1007_v37  ;;  %v1014_v41 = vld [vmem:[%s2433_s1 + $0x58] sm:$0xff] (!%p127_p3)  ;;  %v1011_v43 = vld [vmem:[%s2433_s1 + $0x40] sm:$0xff] (!%p127_p3)  ;;  %v1013_v44 = vld [vmem:[%s2433_s1 + $0x50] sm:$0xff] (!%p127_p3)  ;;  %s1710_s8 = smov (!%p127_p3), 48   ;;  %vm382_vm2 = vcmask (!%p127_p3), 195712  }
   0xd   : > { %1592 = vmatpush1.bf16.msra.mxu0 (!%p127_p3), %v1591_v31  ;;  %1610 = vmatpush1.bf16.msra.mxu1 (!%p127_p3), %v1591_v31  ;;  %v1597_v42 = vpack.c.bf16 (!%p127_p3), %v1014_v41, %v1012_v40  ;;  %v1599_v45 = vpack.c.bf16 (!%p127_p3), %v1013_v44, %v1011_v43  ;;  %v1016_v46 = vld [vmem:[%s2433_s1 + $0x68] sm:$0xff] (!%p127_p3)  ;;  %v1018_v47 = vld [vmem:[%s2433_s1 + $0x78] sm:$0xff] (!%p127_p3)  ;;  %v1015_v49 = vld [vmem:[%s2433_s1 + $0x60] sm:$0xff] (!%p127_p3)  ;;  %s1711_s29 = smov (!%p127_p3), 56   ;;  %s1713_s7 = smov (!%p127_p3), 64   ;;  %vm482_vm3 = vcmask (!%p127_p3), 261312  }
   0xe   : > { %1594 = vmatprep.subr.bf16.mxu0 (!%p127_p3), %v1593_v36  ;;  %1606 = vmatprep.subr.bf16.mxu1 (!%p127_p3), %v1593_v36  ;;  %v1601_v48 = vpack.c.bf16 (!%p127_p3), %v1018_v47, %v1016_v46  ;;  %v1017_v50 = vld [vmem:[%s2433_s1 + $0x70] sm:$0xff] (!%p127_p3)  ;;  %v1020_v54 = vld [vmem:[%s2433_s1 + $0x88] sm:$0xff] (!%p127_p3)  ;;  %v1019_v55 = vld [vmem:[%s2433_s1 + $0x80] sm:$0xff] (!%p127_p3)  ;;  %vm579_vm4 = vcmask (!%p127_p3), 326912   ;;  %vm676_vm5 = vcmask (!%p127_p3), 392512   ;;  %vm776_vm6 = vcmask (!%p127_p3), 458112  }
   0xf   : > { %v1603_v51 = vpack.c.bf16 (!%p127_p3), %v1017_v50, %v1015_v49  ;;  %vm873_vm7 = vcmask (!%p127_p3), 523712   ;;  %vm970_vm8 = vcmask (!%p127_p3), 589312   ;;  %vm1021_vm9 = vcmask (!%p127_p3), 588800  }
  0x10   : > { %s2446_s10 = smov (!%p153_p5, %s1691_s10), 7 }
  0x11   : > { %s1615_s17 = smul.u32 432, %s2446_s10  ;;  %1596 = vmatpush1.bf16.msra.mxu0 %v1595_v39  ;;  %1611 = vmatpush1.bf16.msra.mxu1 %v1595_v39 }
  0x12   : > { %1598 = vmatprep.subr.bf16.mxu0 %v1597_v42  ;;  %1607 = vmatprep.subr.bf16.mxu1 %v1597_v42 }
  0x13   : > { %s157_s20 = scalar_lea.vmem %s2432_s0, %s1615_s17 }
  0x14   : > { %s1768_s21 = scalar_lea.vmem %s157_s20, %s1470_s16 }
  0x15   : > { %v302_v0 = vld [vmem:[%s1768_s21 + $0x2] sm:$0xff]  ;;  %v1775_v2 = vld [vmem:[%s1768_s21 + $0x78] sm:$0xff]  ;;  %v1792_v6 = vld [vmem:[%s1768_s21 + $0x90] sm:$0xff]  ;;  %1600 = vmatpush1.bf16.msra.mxu0 %v1599_v45  ;;  %1612 = vmatpush1.bf16.msra.mxu1 %v1599_v45 }
  0x16   : > { %v205_v1 = vld [vmem:[%s1768_s21 + $0x1] sm:$0xff]  ;;  %334 = vrot.lane.b32.xlu1 %v302_v0, %s1705_s22  ;;  %v1473_v5 = vld [vmem:[%s1768_s21 + $0x18] sm:$0xff]  ;;  %199 = vst.msk [vmem:[#allocation2 + $0x50] sm:$0xff] %vm188_vm0, %v1775_v2  ;;  %v1795_v7 = vld [vmem:[%s1768_s21 + $0x30] sm:$0xff]  ;;  %1602 = vmatprep.subr.bf16.mxu0 %v1601_v48 }
  0x17   : > { %237 = vrot.lane.b32.xlu0 %v205_v1, %s1706_s23  ;;  %v1778_v3 = vld [vmem:[%s1768_s21 + $0x62] sm:$0xff]  ;;  %191 = vst.msk [vmem:[#allocation2 + $0x10] sm:$0xff] %vm188_vm0, %v1473_v5  ;;  %201 = vst.msk [vmem:[#allocation2 + $0x60] sm:$0xff] %vm188_vm0, %v1792_v6  ;;  %v1815_v10 = vld [vmem:[%s1768_s21 + $0x98] sm:$0xff]  ;;  %1608 = vmatprep.subr.bf16.mxu1 %v1601_v48 }
  0x18   : > { %v1781_v4 = vld [vmem:[%s1768_s21 + $0x61] sm:$0xff]  ;;  %193 = vst.msk [vmem:[#allocation2 + $0x20] sm:$0xff] %vm188_vm0, %v1795_v7  ;;  %v1818_v11 = vld [vmem:[%s1768_s21 + $0x79] sm:$0xff]  ;;  %202 = vst.msk [vmem:[#allocation2 + $0x68] sm:$0xff] %vm188_vm0, %v1815_v10 }
  0x19   : > { %v1798_v8 = vld [vmem:[%s1768_s21 + $0x80] sm:$0xff]  ;;  %v1824_v13 = vld [vmem:[%s1768_s21 + $0x38] sm:$0xff]  ;;  %v1829_v14 = vld [vmem:[%s1768_s21 + $0xa8] sm:$0xff]  ;;  %1604 = vmatpush1.bf16.msra.mxu0 %v1603_v51  ;;  %1613 = vmatpush1.bf16.msra.mxu1 %v1603_v51 }
  0x1a   : > { %350 = vrot.lane.b32.xlu1 %v1778_v3, %s1705_s22  ;;  %v1801_v9 = vld [vmem:[%s1768_s21 + $0x20] sm:$0xff]  ;;  %200 = vst.msk [vmem:[#allocation2 + $0x58] sm:$0xff] %vm188_vm0, %v1798_v8  ;;  %194 = vst.msk [vmem:[#allocation2 + $0x28] sm:$0xff] %vm188_vm0, %v1824_v13  ;;  %v1834_v15 = vld [vmem:[%s1768_s21 + $0x48] sm:$0xff]  ;;  %1086 = vmatprep.subr.mxu0 %v1020_v54 }
  0x1b   : > { %253 = vrot.lane.b32.xlu0 %v1781_v4, %s1706_s23  ;;  %192 = vst.msk [vmem:[#allocation2 + $0x18] sm:$0xff] %vm188_vm0, %v1801_v9  ;;  %v1821_v12 = vld [vmem:[%s1768_s21 + $0x19] sm:$0xff]  ;;  %203 = vst.msk [vmem:[#allocation2 + $0x70] sm:$0xff] %vm188_vm0, %v1829_v14  ;;  %v1843_v16 = vld [vmem:[%s1768_s21 + $0x69] sm:$0xff]  ;;  %1609 = vmatprep.subr.mxu1 %v1020_v54 }
  0x1c   : > { %v206_v17 = vld [vmem:[%s1768_s21 + $0x9] sm:$0xff]  ;;  %195 = vst.msk [vmem:[#allocation2 + $0x30] sm:$0xff] %vm188_vm0, %v1834_v15  ;;  %v172_v18 = vld [vmem:[%s1768_s21] sm:$0xff]  ;;  %v1949_v52 = vld [vmem:[%s1768_s21 + $0x91] sm:$0xff] }
  0x1d   : > { %v1850_v19 = vld [vmem:[%s1768_s21 + $0x60] sm:$0xff]  ;;  %v1853_v20 = vld [vmem:[%s1768_s21 + $0xb0] sm:$0xff]  ;;  %189 = vst.msk [vmem:[#allocation2] sm:$0xff] %vm188_vm0, %v172_v18  ;;  %v1862_v22 = vld [vmem:[%s1768_s21 + $0x68] sm:$0xff]  ;;  %1087 = vmatpush1.msra.mxu0 %v1019_v55  ;;  %1614 = vmatpush1.msra.mxu1 %v1019_v55 }
  0x1e   : > { %450 = vrot.lane.b32.xlu1 %v1775_v2, %s1707_s24  ;;  %197 = vst.msk [vmem:[#allocation2 + $0x40] sm:$0xff] %vm188_vm0, %v1850_v19  ;;  %v1859_v21 = vld [vmem:[%s1768_s21 + $0x50] sm:$0xff]  ;;  %v173_v23 = vld [vmem:[%s1768_s21 + $0x8] sm:$0xff]  ;;  %204 = vst.msk [vmem:[#allocation2 + $0x78] sm:$0xff] %vm188_vm0, %v1853_v20 }
  0x1f   : > { %434 = vrot.lane.b32.xlu0 %v1473_v5, %s1707_s24  ;;  %198 = vst.msk [vmem:[#allocation2 + $0x48] sm:$0xff] %vm188_vm0, %v1862_v22  ;;  %190 = vst.msk [vmem:[#allocation2 + $0x8] sm:$0xff] %vm188_vm0, %v173_v23  ;;  %v1876_v24 = vld [vmem:[%s1768_s21 + $0x7a] sm:$0xff]  ;;  %v1898_v32 = vld [vmem:[%s1768_s21 + $0x6a] sm:$0xff] }
  0x20   : > { %196 = vst.msk [vmem:[#allocation2 + $0x38] sm:$0xff] %vm188_vm0, %v1859_v21  ;;  %v1879_v25 = vld [vmem:[%s1768_s21 + $0x1a] sm:$0xff]  ;;  %v303_v33 = vld [vmem:[%s1768_s21 + $0xa] sm:$0xff]  ;;  %v1563_v59 = vld [vmem:[%s1768_s21 + $0x92] sm:$0xff] }
  0x21   : > { %v1952_v53 = vld [vmem:[%s1768_s21 + $0x31] sm:$0xff]  ;;  %v1965_v56 = vld [vmem:[%s1768_s21 + $0x81] sm:$0xff]  ;;  %v2001_v63 = vld [vmem:[%s1768_s21 + $0x99] sm:$0xff] }
  0x22   : > { %547 = vrot.lane.b32.xlu1 %v1818_v11, %s1708_s25  ;;  %v1490_v57 = vld [vmem:[%s1768_s21 + $0x21] sm:$0xff]  ;;  %v1555_v60 = vld [vmem:[%s1768_s21 + $0x32] sm:$0xff] }
  0x23   : > { %531 = vrot.lane.b32.xlu0 %v1821_v12, %s1708_s25  ;;  %v1982_v61 = vld [vmem:[%s1768_s21 + $0x82] sm:$0xff]  ;;  %v2004_v0 = vld [vmem:[%s1768_s21 + $0x39] sm:$0xff]  ;;  %v2091_v28 = vld [vmem:[%s1768_s21 + $0xb1] sm:$0xff] }
  0x24   : > { %v1506_v62 = vld [vmem:[%s1768_s21 + $0x22] sm:$0xff]  ;;  %v2015_v1 = vld [vmem:[%s1768_s21 + $0x9a] sm:$0xff]  ;;  %v2094_v29 = vld [vmem:[%s1768_s21 + $0x51] sm:$0xff] }
  0x25   : > { %v2018_v5 = vld [vmem:[%s1768_s21 + $0x3a] sm:$0xff]  ;;  %v2112_v34 = vld [vmem:[%s1768_s21 + $0x52] sm:$0xff] }
  0x26   : > { %255 = vrot.lane.b32.xlu1 %v1843_v16, %s1706_s23  ;;  %v2139_v43 = vld [vmem:[%s1768_s21 + $0xc0] sm:$0xff] }
  0x27   : > { %239 = vrot.lane.b32.xlu0 %v206_v17, %s1706_s23  ;;  %v2154_v48 = vld [vmem:[%s1768_s21 + $0xc1] sm:$0xff] }
  0x2a   : > { %644 = vrot.lane.b32.xlu1 %v1876_v24, %s1709_s6 }
  0x2b   : > { %628 = vrot.lane.b32.xlu0 %v1879_v25, %s1709_s6 }
  0x2e   : > { %352 = vrot.lane.b32.xlu1 %v1898_v32, %s1705_s22 }
  0x2f   : > { %336 = vrot.lane.b32.xlu0 %v303_v33, %s1705_s22  ;;  %v2109_v33 = vld [vmem:[%s1768_s21 + $0xb2] sm:$0xff] }
  0x32   : > { %744 = vrot.lane.b32.xlu1 %v1792_v6, %s1710_s8 }
  0x33   : > { %728 = vrot.lane.b32.xlu0 %v1795_v7, %s1710_s8 }
  0x36   : > { %452 = vrot.lane.b32.xlu1 %v1798_v8, %s1707_s24 }
  0x37   : > { %436 = vrot.lane.b32.xlu0 %v1801_v9, %s1707_s24  ;;  %v2055_v9 = vld [vmem:[%s1768_s21 + $0xaa] sm:$0xff] }
  0x3a   : > { %841 = vrot.lane.b32.xlu1 %v1949_v52, %s1711_s29 }
  0x3b   : > { %825 = vrot.lane.b32.xlu0 %v1952_v53, %s1711_s29 }
  0x3e   : > { %549 = vrot.lane.b32.xlu1 %v1965_v56, %s1708_s25 }
  0x3f   : > { %533 = vrot.lane.b32.xlu0 %v1490_v57, %s1708_s25 }
  0x42   : > { %938 = vrot.lane.b32.xlu1 %v1563_v59, %s1713_s7 }
  0x43   : > { %922 = vrot.lane.b32.xlu0 %v1555_v60, %s1713_s7 }
  0x46   : > { %257 = vrot.lane.b32.xlu1 %v1818_v11, %s1706_s23 }
  0x47   : > { %241 = vrot.lane.b32.xlu0 %v1821_v12, %s1706_s23 }
  0x4a   : > { %646 = vrot.lane.b32.xlu1 %v1982_v61, %s1709_s6 }
  0x4b   : > { %630 = vrot.lane.b32.xlu0 %v1506_v62, %s1709_s6 }
  0x4e   : > { %354 = vrot.lane.b32.xlu1 %v1876_v24, %s1705_s22 }
  0x4f   : > { %338 = vrot.lane.b32.xlu0 %v1879_v25, %s1705_s22 }
  0x52   : > { %746 = vrot.lane.b32.xlu1 %v1815_v10, %s1710_s8 }
  0x53   : > { %730 = vrot.lane.b32.xlu0 %v1824_v13, %s1710_s8 }
  0x56   : > { %454 = vrot.lane.b32.xlu1 %v1792_v6, %s1707_s24  ;;  %v2041_v6 = vld [vmem:[%s1768_s21 + $0xa9] sm:$0xff] }
  0x57   : > { %438 = vrot.lane.b32.xlu0 %v1795_v7, %s1707_s24  ;;  %v2044_v7 = vld [vmem:[%s1768_s21 + $0x49] sm:$0xff] }
  0x5a   : > { %843 = vrot.lane.b32.xlu1 %v2001_v63, %s1711_s29 }
  0x5b   : > { %827 = vrot.lane.b32.xlu0 %v2004_v0, %s1711_s29 }
  0x5e   : > { %551 = vrot.lane.b32.xlu1 %v1949_v52, %s1708_s25 }
  0x5f   : > { %535 = vrot.lane.b32.xlu0 %v1952_v53, %s1708_s25 }
  0x62   : > { %940 = vrot.lane.b32.xlu1 %v2015_v1, %s1713_s7 }
  0x63   : > { %924 = vrot.lane.b32.xlu0 %v2018_v5, %s1713_s7 }
  0x66   : > { %259 = vrot.lane.b32.xlu1 %v1965_v56, %s1706_s23 }
  0x67   : > { %243 = vrot.lane.b32.xlu0 %v1490_v57, %s1706_s23 }
  0x6a   : > { %648 = vrot.lane.b32.xlu1 %v1563_v59, %s1709_s6 }
  0x6b   : > { %632 = vrot.lane.b32.xlu0 %v1555_v60, %s1709_s6 }
  0x6e   : > { %356 = vrot.lane.b32.xlu1 %v1982_v61, %s1705_s22 }
  0x6f   : > { %340 = vrot.lane.b32.xlu0 %v1506_v62, %s1705_s22 }
  0x72   : > { %748 = vrot.lane.b32.xlu1 %v1829_v14, %s1710_s8 }
  0x73   : > { %732 = vrot.lane.b32.xlu0 %v1834_v15, %s1710_s8 }
  0x76   : > { %456 = vrot.lane.b32.xlu1 %v1815_v10, %s1707_s24  ;;  %v2058_v10 = vld [vmem:[%s1768_s21 + $0x4a] sm:$0xff] }
  0x77   : > { %440 = vrot.lane.b32.xlu0 %v1824_v13, %s1707_s24 }
  0x7a   : > { %845 = vrot.lane.b32.xlu1 %v2041_v6, %s1711_s29 }
  0x7b   : > { %829 = vrot.lane.b32.xlu0 %v2044_v7, %s1711_s29 }
  0x7e   : > { %553 = vrot.lane.b32.xlu1 %v2001_v63, %s1708_s25 }
  0x7f   : > { %537 = vrot.lane.b32.xlu0 %v2004_v0, %s1708_s25 }
  0x82   : > { %942 = vrot.lane.b32.xlu1 %v2055_v9, %s1713_s7 }
  0x83   : > { %926 = vrot.lane.b32.xlu0 %v2058_v10, %s1713_s7 }
  0x86   : > { %261 = vrot.lane.b32.xlu1 %v1949_v52, %s1706_s23 }
  0x87   : > { %245 = vrot.lane.b32.xlu0 %v1952_v53, %s1706_s23  ;;  %v2171_v53 = vld [vmem:[%s1768_s21 + $0xc2] sm:$0xff] }
  0x88   : > { %v335_v12 = vpop.permute.xlu1 %334 }
  0x89   : > { %v238_v13 = vpop.permute.xlu0 %237 }
  0x8a   : > { %286 = vst.msk [vmem:[#allocation2] sm:$0xff] %vm285_vm1, %v238_v13  ;;  %650 = vrot.lane.b32.xlu1 %v2015_v1, %s1709_s6 }
  0x8b   : > { %634 = vrot.lane.b32.xlu0 %v2018_v5, %s1709_s6  ;;  %383 = vst.msk [vmem:[#allocation2] sm:$0xff] %vm382_vm2, %v335_v12 }
  0x8c   : > { %v351_v17 = vpop.permute.xlu1 %350 }
  0x8d   : > { %v254_v18 = vpop.permute.xlu0 %253 }
  0x8e   : > { %294 = vst.msk [vmem:[#allocation2 + $0x40] sm:$0xff] %vm285_vm1, %v254_v18  ;;  %358 = vrot.lane.b32.xlu1 %v1563_v59, %s1705_s22 }
  0x8f   : > { %342 = vrot.lane.b32.xlu0 %v1555_v60, %s1705_s22  ;;  %391 = vst.msk [vmem:[#allocation2 + $0x40] sm:$0xff] %vm382_vm2, %v351_v17 }
  0x90   : > { %v451_v23 = vpop.permute.xlu1 %450 }
  0x91   : > { %v435_v25 = vpop.permute.xlu0 %434  ;;  %491 = vst.msk [vmem:[#allocation2 + $0x40] sm:$0xff] %vm482_vm3, %v451_v23 }
  0x92   : > { %483 = vst.msk [vmem:[#allocation2] sm:$0xff] %vm482_vm3, %v435_v25  ;;  %750 = vrot.lane.b32.xlu1 %v1853_v20, %s1710_s8 }
  0x93   : > { %734 = vrot.lane.b32.xlu0 %v1859_v21, %s1710_s8 }
  0x94   : > { %v548_v26 = vpop.permute.xlu1 %547 }
  0x95   : > { %v532_v27 = vpop.permute.xlu0 %531  ;;  %588 = vst.msk [vmem:[#allocation2 + $0x40] sm:$0xff] %vm579_vm4, %v548_v26 }
  0x96   : > { %580 = vst.msk [vmem:[#allocation2] sm:$0xff] %vm579_vm4, %v532_v27  ;;  %458 = vrot.lane.b32.xlu1 %v1829_v14, %s1707_s24 }
  0x97   : > { %442 = vrot.lane.b32.xlu0 %v1834_v15, %s1707_s24 }
  0x98   : > { %v256_v30 = vpop.permute.xlu1 %255 }
  0x99   : > { %v240_v31 = vpop.permute.xlu0 %239  ;;  %295 = vst.msk [vmem:[#allocation2 + $0x48] sm:$0xff] %vm285_vm1, %v256_v30 }
  0x9a   : > { %287 = vst.msk [vmem:[#allocation2 + $0x8] sm:$0xff] %vm285_vm1, %v240_v31  ;;  %847 = vrot.lane.b32.xlu1 %v2091_v28, %s1711_s29 }
  0x9b   : > { %831 = vrot.lane.b32.xlu0 %v2094_v29, %s1711_s29 }
  0x9c   : > { %v645_v14 = vpop.permute.xlu1 %644 }
  0x9d   : > { %v629_v15 = vpop.permute.xlu0 %628  ;;  %685 = vst.msk [vmem:[#allocation2 + $0x40] sm:$0xff] %vm676_vm5, %v645_v14 }
  0x9e   : > { %677 = vst.msk [vmem:[#allocation2] sm:$0xff] %vm676_vm5, %v629_v15  ;;  %555 = vrot.lane.b32.xlu1 %v2041_v6, %s1708_s25 }
  0x9f   : > { %539 = vrot.lane.b32.xlu0 %v2044_v7, %s1708_s25 }
  0xa0   : > { %v353_v35 = vpop.permute.xlu1 %352 }
  0xa1   : > { %v337_v36 = vpop.permute.xlu0 %336  ;;  %392 = vst.msk [vmem:[#allocation2 + $0x48] sm:$0xff] %vm382_vm2, %v353_v35 }
  0xa2   : > { %384 = vst.msk [vmem:[#allocation2 + $0x8] sm:$0xff] %vm382_vm2, %v337_v36  ;;  %944 = vrot.lane.b32.xlu1 %v2109_v33, %s1713_s7 }
  0xa3   : > { %928 = vrot.lane.b32.xlu0 %v2112_v34, %s1713_s7 }
  0xa4   : > { %v745_v37 = vpop.permute.xlu1 %744 }
  0xa5   : > { %v729_v38 = vpop.permute.xlu0 %728  ;;  %785 = vst.msk [vmem:[#allocation2 + $0x40] sm:$0xff] %vm776_vm6, %v745_v37 }
  0xa6   : > { %777 = vst.msk [vmem:[#allocation2] sm:$0xff] %vm776_vm6, %v729_v38  ;;  %263 = vrot.lane.b32.xlu1 %v2001_v63, %s1706_s23 }
  0xa7   : > { %247 = vrot.lane.b32.xlu0 %v2004_v0, %s1706_s23 }
  0xa8   : > { %v453_v39 = vpop.permute.xlu1 %452 }
  0xa9   : > { %v437_v40 = vpop.permute.xlu0 %436  ;;  %492 = vst.msk [vmem:[#allocation2 + $0x48] sm:$0xff] %vm482_vm3, %v453_v39 }
  0xaa   : > { %484 = vst.msk [vmem:[#allocation2 + $0x8] sm:$0xff] %vm482_vm3, %v437_v40  ;;  %652 = vrot.lane.b32.xlu1 %v2055_v9, %s1709_s6 }
  0xab   : > { %636 = vrot.lane.b32.xlu0 %v2058_v10, %s1709_s6 }
  0xac   : > { %v842_v41 = vpop.permute.xlu1 %841 }
  0xad   : > { %v826_v42 = vpop.permute.xlu0 %825  ;;  %882 = vst.msk [vmem:[#allocation2 + $0x40] sm:$0xff] %vm873_vm7, %v842_v41 }
  0xae   : > { %874 = vst.msk [vmem:[#allocation2] sm:$0xff] %vm873_vm7, %v826_v42  ;;  %360 = vrot.lane.b32.xlu1 %v2015_v1, %s1705_s22  ;;  %v2200_v1 = vld [vmem:[%s1768_s21 + $0xc8] sm:$0xff] }
  0xaf   : > { %344 = vrot.lane.b32.xlu0 %v2018_v5, %s1705_s22 }
  0xb0   : > { %v550_v44 = vpop.permute.xlu1 %549 }
  0xb1   : > { %v534_v45 = vpop.permute.xlu0 %533  ;;  %589 = vst.msk [vmem:[#allocation2 + $0x48] sm:$0xff] %vm579_vm4, %v550_v44  ;;  %v1538_v44 = vld [vmem:[%s1768_s21 + $0xe0] sm:$0xff] }
  0xb2   : > { %581 = vst.msk [vmem:[#allocation2 + $0x8] sm:$0xff] %vm579_vm4, %v534_v45  ;;  %752 = vrot.lane.b32.xlu1 %v2139_v43, %s1710_s8 }
  0xb3   : > { %736 = vrot.lane.b32.xlu0 %v1850_v19, %s1710_s8 }
  0xb4   : > { %v939_v46 = vpop.permute.xlu1 %938 }
  0xb5   : > { %v923_v47 = vpop.permute.xlu0 %922  ;;  %979 = vst.msk [vmem:[#allocation2 + $0x40] sm:$0xff] %vm970_vm8, %v939_v46 }
  0xb6   : > { %971 = vst.msk [vmem:[#allocation2] sm:$0xff] %vm970_vm8, %v923_v47  ;;  %460 = vrot.lane.b32.xlu1 %v1853_v20, %s1707_s24 }
  0xb7   : > { %444 = vrot.lane.b32.xlu0 %v1859_v21, %s1707_s24 }
  0xb8   : > { %v258_v49 = vpop.permute.xlu1 %257 }
  0xb9   : > { %v242_v50 = vpop.permute.xlu0 %241  ;;  %296 = vst.msk [vmem:[#allocation2 + $0x50] sm:$0xff] %vm285_vm1, %v258_v49 }
  0xba   : > { %288 = vst.msk [vmem:[#allocation2 + $0x10] sm:$0xff] %vm285_vm1, %v242_v50  ;;  %849 = vrot.lane.b32.xlu1 %v2154_v48, %s1711_s29 }
  0xbb   : > { %833 = vrot.lane.b32.xlu0 %v1781_v4, %s1711_s29 }
  0xbc   : > { %v647_v20 = vpop.permute.xlu1 %646  ;;  %v995_v21 = vld [vmem:[#allocation2 + $0x40] sm:$0xff] }
  0xbd   : > { %v631_v51 = vpop.permute.xlu0 %630  ;;  %v987_v52 = vld [vmem:[#allocation2] sm:$0xff]  ;;  %686 = vst.msk [vmem:[#allocation2 + $0x48] sm:$0xff] %vm676_vm5, %v647_v20  ;;  %1579 = vmatmul.mubr.msk.f32.vlgmr.msra.gmra.mrb[0].mxu1 %vm1021_vm9, %v995_v21 }
  0xbe   : > { %678 = vst.msk [vmem:[#allocation2 + $0x8] sm:$0xff] %vm676_vm5, %v631_v51  ;;  %1571 = vmatmul.mubr.msk.f32.vlgmr.msra.gmra.mrb[0].mxu0 %vm1021_vm9, %v987_v52  ;;  %557 = vrot.lane.b32.xlu1 %v2091_v28, %s1708_s25 }
  0xbf   : > { %541 = vrot.lane.b32.xlu0 %v2094_v29, %s1708_s25  ;;  %1140 = vmatprep.mubr.f32.mxu0 %v1712_v58 }
  0xc0   : > { %1188 = vmatprep.mubr.f32.mxu1 %v1712_v58  ;;  %v355_v54 = vpop.permute.xlu1 %354 }
  0xc1   : > { %v339_v55 = vpop.permute.xlu0 %338  ;;  %393 = vst.msk [vmem:[#allocation2 + $0x50] sm:$0xff] %vm382_vm2, %v355_v54 }
  0xc2   : > { %385 = vst.msk [vmem:[#allocation2 + $0x10] sm:$0xff] %vm382_vm2, %v339_v55  ;;  %946 = vrot.lane.b32.xlu1 %v2171_v53, %s1713_s7 }
  0xc3   : > { %930 = vrot.lane.b32.xlu0 %v1778_v3, %s1713_s7 }
  0xc4   : > { %v747_v57 = vpop.permute.xlu1 %746 }
  0xc5   : > { %v731_v59 = vpop.permute.xlu0 %730  ;;  %786 = vst.msk [vmem:[#allocation2 + $0x48] sm:$0xff] %vm776_vm6, %v747_v57 }
  0xc6   : > { %778 = vst.msk [vmem:[#allocation2 + $0x8] sm:$0xff] %vm776_vm6, %v731_v59  ;;  %265 = vrot.lane.b32.xlu1 %v2041_v6, %s1706_s23 }
  0xc7   : > { %249 = vrot.lane.b32.xlu0 %v2044_v7, %s1706_s23 }
  0xc8   : > { %v455_v60 = vpop.permute.xlu1 %454 }
  0xc9   : > { %v439_v62 = vpop.permute.xlu0 %438  ;;  %493 = vst.msk [vmem:[#allocation2 + $0x50] sm:$0xff] %vm482_vm3, %v455_v60 }
  0xca   : > { %485 = vst.msk [vmem:[#allocation2 + $0x10] sm:$0xff] %vm482_vm3, %v439_v62  ;;  %654 = vrot.lane.b32.xlu1 %v2109_v33, %s1709_s6 }
  0xcb   : > { %638 = vrot.lane.b32.xlu0 %v2112_v34, %s1709_s6 }
  0xcc   : > { %v844_v63 = vpop.permute.xlu1 %843 }
  0xcd   : > { %v828_v0 = vpop.permute.xlu0 %827  ;;  %883 = vst.msk [vmem:[#allocation2 + $0x48] sm:$0xff] %vm873_vm7, %v844_v63 }
  0xce   : > { %875 = vst.msk [vmem:[#allocation2 + $0x8] sm:$0xff] %vm873_vm7, %v828_v0  ;;  %362 = vrot.lane.b32.xlu1 %v2055_v9, %s1705_s22  ;;  %v2215_v9 = vld [vmem:[%s1768_s21 + $0xc9] sm:$0xff] }
  0xcf   : > { %346 = vrot.lane.b32.xlu0 %v2058_v10, %s1705_s22 }
  0xd0   : > { %v552_v5 = vpop.permute.xlu1 %551 }
  0xd1   : > { %v536_v6 = vpop.permute.xlu0 %535  ;;  %590 = vst.msk [vmem:[#allocation2 + $0x50] sm:$0xff] %vm579_vm4, %v552_v5 }
  0xd2   : > { %582 = vst.msk [vmem:[#allocation2 + $0x10] sm:$0xff] %vm579_vm4, %v536_v6  ;;  %754 = vrot.lane.b32.xlu1 %v2200_v1, %s1710_s8 }
  0xd3   : > { %738 = vrot.lane.b32.xlu0 %v1862_v22, %s1710_s8 }
  0xd4   : > { %v941_v7 = vpop.permute.xlu1 %940 }
  0xd5   : > { %v925_v12 = vpop.permute.xlu0 %924  ;;  %980 = vst.msk [vmem:[#allocation2 + $0x48] sm:$0xff] %vm970_vm8, %v941_v7 }
  0xd6   : > { %972 = vst.msk [vmem:[#allocation2 + $0x8] sm:$0xff] %vm970_vm8, %v925_v12  ;;  %462 = vrot.lane.b32.xlu1 %v2139_v43, %s1707_s24 }
  0xd7   : > { %446 = vrot.lane.b32.xlu0 %v1850_v19, %s1707_s24  ;;  %v2232_v19 = vld [vmem:[%s1768_s21 + $0xca] sm:$0xff] }
  0xd8   : > { %v260_v10 = vpop.permute.xlu1 %259 }
  0xd9   : > { %v244_v13 = vpop.permute.xlu0 %243  ;;  %297 = vst.msk [vmem:[#allocation2 + $0x58] sm:$0xff] %vm285_vm1, %v260_v10 }
  0xda   : > { %289 = vst.msk [vmem:[#allocation2 + $0x18] sm:$0xff] %vm285_vm1, %v244_v13  ;;  %851 = vrot.lane.b32.xlu1 %v2215_v9, %s1711_s29 }
  0xdb   : > { %835 = vrot.lane.b32.xlu0 %v1843_v16, %s1711_s29 }
  0xdc   : > { %v649_v17 = vpop.permute.xlu1 %648  ;;  %v996_v25 = vld [vmem:[#allocation2 + $0x48] sm:$0xff] }
  0xdd   : > { %v633_v18 = vpop.permute.xlu0 %632  ;;  %v988_v23 = vld [vmem:[#allocation2 + $0x8] sm:$0xff]  ;;  %687 = vst.msk [vmem:[#allocation2 + $0x50] sm:$0xff] %vm676_vm5, %v649_v17  ;;  %1580 = vmatmul.mubr.msk.f32.gmra.mrb[2].mxu1 %vm1021_vm9, %v996_v25 }
  0xde   : > { %679 = vst.msk [vmem:[#allocation2 + $0x10] sm:$0xff] %vm676_vm5, %v633_v18  ;;  %1572 = vmatmul.mubr.msk.f32.gmra.mrb[2].mxu0 %vm1021_vm9, %v988_v23  ;;  %559 = vrot.lane.b32.xlu1 %v2154_v48, %s1708_s25 }
  0xdf   : > { %543 = vrot.lane.b32.xlu0 %v1781_v4, %s1708_s25  ;;  %1146 = vmatprep.mubr.f32.mxu0 %v1712_v58 }
  0xe0   : > { %1194 = vmatprep.mubr.f32.mxu1 %v1712_v58  ;;  %v357_v26 = vpop.permute.xlu1 %356 }
  0xe1   : > { %v341_v27 = vpop.permute.xlu0 %340  ;;  %394 = vst.msk [vmem:[#allocation2 + $0x58] sm:$0xff] %vm382_vm2, %v357_v26 }
  0xe2   : > { %386 = vst.msk [vmem:[#allocation2 + $0x18] sm:$0xff] %vm382_vm2, %v341_v27  ;;  %948 = vrot.lane.b32.xlu1 %v2232_v19, %s1713_s7 }
  0xe3   : > { %932 = vrot.lane.b32.xlu0 %v1898_v32, %s1713_s7 }
  0xe4   : > { %v749_v30 = vpop.permute.xlu1 %748 }
  0xe5   : > { %v733_v4 = vpop.permute.xlu0 %732  ;;  %787 = vst.msk [vmem:[#allocation2 + $0x50] sm:$0xff] %vm776_vm6, %v749_v30 }
  0xe6   : > { %779 = vst.msk [vmem:[#allocation2 + $0x10] sm:$0xff] %vm776_vm6, %v733_v4  ;;  %267 = vrot.lane.b32.xlu1 %v2091_v28, %s1706_s23  ;;  %v1537_v28 = vld [vmem:[%s1768_s21 + $0xd8] sm:$0xff] }
  0xe7   : > { %251 = vrot.lane.b32.xlu0 %v2094_v29, %s1706_s23  ;;  %s1467_s23 = sshll.u32 %s2446_s10, 5 }
  0xe8   : > { %v457_v31 = vpop.permute.xlu1 %456 }
  0xe9   : > { %v441_v14 = vpop.permute.xlu0 %440  ;;  %494 = vst.msk [vmem:[#allocation2 + $0x58] sm:$0xff] %vm482_vm3, %v457_v31 }
  0xea   : > { %486 = vst.msk [vmem:[#allocation2 + $0x18] sm:$0xff] %vm482_vm3, %v441_v14  ;;  %656 = vrot.lane.b32.xlu1 %v2171_v53, %s1709_s6 }
  0xeb   : > { %640 = vrot.lane.b32.xlu0 %v1778_v3, %s1709_s6 }
  0xec   : > { %v846_v15 = vpop.permute.xlu1 %845 }
  0xed   : > { %v830_v35 = vpop.permute.xlu0 %829  ;;  %884 = vst.msk [vmem:[#allocation2 + $0x50] sm:$0xff] %vm873_vm7, %v846_v15 }
  0xee   : > { %876 = vst.msk [vmem:[#allocation2 + $0x10] sm:$0xff] %vm873_vm7, %v830_v35  ;;  %364 = vrot.lane.b32.xlu1 %v2109_v33, %s1705_s22  ;;  %v1553_v33 = vld [vmem:[%s1768_s21 + $0xd9] sm:$0xff] }
  0xef   : > { %348 = vrot.lane.b32.xlu0 %v2112_v34, %s1705_s22 }
  0xf0   : > { %v554_v29 = vpop.permute.xlu1 %553 }
  0xf1   : > { %v538_v36 = vpop.permute.xlu0 %537  ;;  %591 = vst.msk [vmem:[#allocation2 + $0x58] sm:$0xff] %vm579_vm4, %v554_v29 }
  0xf2   : > { %583 = vst.msk [vmem:[#allocation2 + $0x18] sm:$0xff] %vm579_vm4, %v538_v36  ;;  %756 = vrot.lane.b32.xlu1 %v1537_v28, %s1710_s8 }
  0xf3   : > { %740 = vrot.lane.b32.xlu0 %v1775_v2, %s1710_s8 }
  0xf4   : > { %v943_v3 = vpop.permute.xlu1 %942 }
  0xf5   : > { %v927_v37 = vpop.permute.xlu0 %926  ;;  %981 = vst.msk [vmem:[#allocation2 + $0x50] sm:$0xff] %vm970_vm8, %v943_v3 }
  0xf6   : > { %973 = vst.msk [vmem:[#allocation2 + $0x10] sm:$0xff] %vm970_vm8, %v927_v37  ;;  %464 = vrot.lane.b32.xlu1 %v2200_v1, %s1707_s24 }
  0xf7   : > { %448 = vrot.lane.b32.xlu0 %v1862_v22, %s1707_s24 }
  0xf8   : > { %v262_v34 = vpop.permute.xlu1 %261 }
  0xf9   : > { %v246_v38 = vpop.permute.xlu0 %245  ;;  %298 = vst.msk [vmem:[#allocation2 + $0x60] sm:$0xff] %vm285_vm1, %v262_v34 }
  0xfa   : > { %290 = vst.msk [vmem:[#allocation2 + $0x20] sm:$0xff] %vm285_vm1, %v246_v38  ;;  %853 = vrot.lane.b32.xlu1 %v1553_v33, %s1711_s29 }
  0xfb   : > { %837 = vrot.lane.b32.xlu0 %v1818_v11, %s1711_s29  ;;  %v1569_v11 = vld [vmem:[%s1768_s21 + $0xda] sm:$0xff] }
  0xfc   : > { %v651_v2 = vpop.permute.xlu1 %650  ;;  %v997_v41 = vld [vmem:[#allocation2 + $0x50] sm:$0xff] }
  0xfd   : > { %v635_v39 = vpop.permute.xlu0 %634  ;;  %v989_v40 = vld [vmem:[#allocation2 + $0x10] sm:$0xff]  ;;  %688 = vst.msk [vmem:[#allocation2 + $0x58] sm:$0xff] %vm676_vm5, %v651_v2  ;;  %1581 = vmatmul.mubr.msk.f32.gmra.mrb[4].mxu1 %vm1021_vm9, %v997_v41 }
  0xfe   : > { %680 = vst.msk [vmem:[#allocation2 + $0x18] sm:$0xff] %vm676_vm5, %v635_v39  ;;  %1573 = vmatmul.mubr.msk.f32.gmra.mrb[4].mxu0 %vm1021_vm9, %v989_v40  ;;  %561 = vrot.lane.b32.xlu1 %v2215_v9, %s1708_s25 }
  0xff   : > { %545 = vrot.lane.b32.xlu0 %v1843_v16, %s1708_s25  ;;  %1152 = vmatprep.mubr.f32.mxu0 %v1712_v58 }
 0x100   : > { %1200 = vmatprep.mubr.f32.mxu1 %v1712_v58  ;;  %v359_v22 = vpop.permute.xlu1 %358 }
 0x101   : > { %v343_v42 = vpop.permute.xlu0 %342  ;;  %395 = vst.msk [vmem:[#allocation2 + $0x60] sm:$0xff] %vm382_vm2, %v359_v22 }
 0x102   : > { %387 = vst.msk [vmem:[#allocation2 + $0x20] sm:$0xff] %vm382_vm2, %v343_v42  ;;  %950 = vrot.lane.b32.xlu1 %v1569_v11, %s1713_s7 }
 0x103   : > { %934 = vrot.lane.b32.xlu0 %v1876_v24, %s1713_s7  ;;  %v1554_v24 = vld [vmem:[%s1768_s21 + $0xe1] sm:$0xff] }
 0x104   : > { %v751_v43 = vpop.permute.xlu1 %750 }
 0x105   : > { %v735_v16 = vpop.permute.xlu0 %734  ;;  %788 = vst.msk [vmem:[#allocation2 + $0x58] sm:$0xff] %vm776_vm6, %v751_v43 }
 0x106   : > { %780 = vst.msk [vmem:[#allocation2 + $0x18] sm:$0xff] %vm776_vm6, %v735_v16  ;;  %658 = vrot.lane.b32.xlu1 %v2232_v19, %s1709_s6 }
 0x107   : > { %642 = vrot.lane.b32.xlu0 %v1898_v32, %s1709_s6  ;;  %v1570_v32 = vld [vmem:[%s1768_s21 + $0xe2] sm:$0xff]  ;;  %s1465_s21 = sshll.u32 %s1687_s9, 3 }
 0x108   : > { %v459_v45 = vpop.permute.xlu1 %458  ;;  %p161_p6 = scmp.lt.s32.totalorder %s1465_s21, 15 }
 0x109   : > { %v443_v46 = vpop.permute.xlu0 %442  ;;  %495 = vst.msk [vmem:[#allocation2 + $0x60] sm:$0xff] %vm482_vm3, %v459_v45 }
 0x10a   : > { %487 = vst.msk [vmem:[#allocation2 + $0x20] sm:$0xff] %vm482_vm3, %v443_v46  ;;  %758 = vrot.lane.b32.xlu1 %v1538_v44, %s1710_s8  ;;  %s2448_s21 = smov (!%p161_p6, %s1465_s21), 15 }
 0x10b   : > { %742 = vrot.lane.b32.xlu0 %v1798_v8, %s1710_s8  ;;  %s1466_s22 = sshll.u32 %s2448_s21, 1 }
 0x10c   : > { %v848_v47 = vpop.permute.xlu1 %847  ;;  %s165_s24 = sadd.s32 %s1467_s23, %s1466_s22 }
 0x10d   : > { %v832_v48 = vpop.permute.xlu0 %831  ;;  %885 = vst.msk [vmem:[#allocation2 + $0x58] sm:$0xff] %vm873_vm7, %v848_v47  ;;  %s1468_s9 = sshll.u32 %s165_s24, 3 }
 0x10e   : > { %877 = vst.msk [vmem:[#allocation2 + $0x18] sm:$0xff] %vm873_vm7, %v832_v48  ;;  %855 = vrot.lane.b32.xlu1 %v1554_v24, %s1711_s29  ;;  %s2399_s6 = scalar_lea.vmem %s2434_s2, %s1468_s9 }
 0x10f   : > { %839 = vrot.lane.b32.xlu0 %v1965_v56, %s1711_s29 }
 0x110   : > { %v556_v49 = vpop.permute.xlu1 %555 }
 0x111   : > { %v540_v50 = vpop.permute.xlu0 %539  ;;  %592 = vst.msk [vmem:[#allocation2 + $0x60] sm:$0xff] %vm579_vm4, %v556_v49 }
 0x112   : > { %584 = vst.msk [vmem:[#allocation2 + $0x20] sm:$0xff] %vm579_vm4, %v540_v50  ;;  %952 = vrot.lane.b32.xlu1 %v1570_v32, %s1713_s7 }
 0x113   : > { %936 = vrot.lane.b32.xlu0 %v1982_v61, %s1713_s7 }
 0x114   : > { %v945_v8 = vpop.permute.xlu1 %944 }
 0x115   : > { %v929_v20 = vpop.permute.xlu0 %928  ;;  %982 = vst.msk [vmem:[#allocation2 + $0x58] sm:$0xff] %vm970_vm8, %v945_v8 }
 0x116   : > { %974 = vst.msk [vmem:[#allocation2 + $0x18] sm:$0xff] %vm970_vm8, %v929_v20 }
 0x118   : > { %v264_v51 = vpop.permute.xlu1 %263 }
 0x119   : > { %v248_v56 = vpop.permute.xlu0 %247  ;;  %299 = vst.msk [vmem:[#allocation2 + $0x68] sm:$0xff] %vm285_vm1, %v264_v51 }
 0x11a   : > { %291 = vst.msk [vmem:[#allocation2 + $0x28] sm:$0xff] %vm285_vm1, %v248_v56 }
 0x11c   : > { %v653_v52 = vpop.permute.xlu1 %652  ;;  %v998_v54 = vld [vmem:[#allocation2 + $0x58] sm:$0xff] }
 0x11d   : > { %v637_v21 = vpop.permute.xlu0 %636  ;;  %v990_v53 = vld [vmem:[#allocation2 + $0x18] sm:$0xff]  ;;  %689 = vst.msk [vmem:[#allocation2 + $0x60] sm:$0xff] %vm676_vm5, %v653_v52  ;;  %1582 = vmatmul.mubr.msk.f32.gmra.mrb[6].mxu1 %vm1021_vm9, %v998_v54 }
 0x11e   : > { %681 = vst.msk [vmem:[#allocation2 + $0x20] sm:$0xff] %vm676_vm5, %v637_v21  ;;  %1574 = vmatmul.mubr.msk.f32.gmra.mrb[6].mxu0 %vm1021_vm9, %v990_v53  ;;  %1206 = vmatprep.mubr.f32.mxu1 %v1712_v58 }
 0x11f   : > { %1158 = vmatprep.mubr.f32.mxu0 %v1712_v58 }
 0x120   : > { %v361_v61 = vpop.permute.xlu1 %360 }
 0x121   : > { %v345_v55 = vpop.permute.xlu0 %344  ;;  %396 = vst.msk [vmem:[#allocation2 + $0x68] sm:$0xff] %vm382_vm2, %v361_v61 }
 0x122   : > { %388 = vst.msk [vmem:[#allocation2 + $0x28] sm:$0xff] %vm382_vm2, %v345_v55 }
 0x124   : > { %v753_v57 = vpop.permute.xlu1 %752 }
 0x125   : > { %v737_v59 = vpop.permute.xlu0 %736  ;;  %789 = vst.msk [vmem:[#allocation2 + $0x60] sm:$0xff] %vm776_vm6, %v753_v57 }
 0x126   : > { %781 = vst.msk [vmem:[#allocation2 + $0x20] sm:$0xff] %vm776_vm6, %v737_v59 }
 0x128   : > { %v461_v60 = vpop.permute.xlu1 %460 }
 0x129   : > { %v445_v62 = vpop.permute.xlu0 %444  ;;  %496 = vst.msk [vmem:[#allocation2 + $0x68] sm:$0xff] %vm482_vm3, %v461_v60 }
 0x12a   : > { %488 = vst.msk [vmem:[#allocation2 + $0x28] sm:$0xff] %vm482_vm3, %v445_v62 }
 0x12c   : > { %v850_v63 = vpop.permute.xlu1 %849 }
 0x12d   : > { %v834_v0 = vpop.permute.xlu0 %833  ;;  %886 = vst.msk [vmem:[#allocation2 + $0x60] sm:$0xff] %vm873_vm7, %v850_v63 }
 0x12e   : > { %878 = vst.msk [vmem:[#allocation2 + $0x20] sm:$0xff] %vm873_vm7, %v834_v0 }
 0x130   : > { %v558_v1 = vpop.permute.xlu1 %557 }
 0x131   : > { %v542_v5 = vpop.permute.xlu0 %541  ;;  %593 = vst.msk [vmem:[#allocation2 + $0x68] sm:$0xff] %vm579_vm4, %v558_v1 }
 0x132   : > { %585 = vst.msk [vmem:[#allocation2 + $0x28] sm:$0xff] %vm579_vm4, %v542_v5 }
 0x134   : > { %v947_v6 = vpop.permute.xlu1 %946 }
 0x135   : > { %v931_v7 = vpop.permute.xlu0 %930  ;;  %983 = vst.msk [vmem:[#allocation2 + $0x60] sm:$0xff] %vm970_vm8, %v947_v6 }
 0x136   : > { %975 = vst.msk [vmem:[#allocation2 + $0x20] sm:$0xff] %vm970_vm8, %v931_v7 }
 0x138   : > { %v266_v12 = vpop.permute.xlu1 %265 }
 0x139   : > { %v250_v9 = vpop.permute.xlu0 %249  ;;  %300 = vst.msk [vmem:[#allocation2 + $0x70] sm:$0xff] %vm285_vm1, %v266_v12 }
 0x13a   : > { %292 = vst.msk [vmem:[#allocation2 + $0x30] sm:$0xff] %vm285_vm1, %v250_v9 }
 0x13c   : > { %v655_v10 = vpop.permute.xlu1 %654  ;;  %v999_v18 = vld [vmem:[#allocation2 + $0x60] sm:$0xff] }
 0x13d   : > { %v639_v13 = vpop.permute.xlu0 %638  ;;  %v991_v17 = vld [vmem:[#allocation2 + $0x20] sm:$0xff]  ;;  %690 = vst.msk [vmem:[#allocation2 + $0x68] sm:$0xff] %vm676_vm5, %v655_v10  ;;  %1583 = vmatmul.mubr.msk.f32.gmra.mrb[8].mxu1 %vm1021_vm9, %v999_v18 }
 0x13e   : > { %682 = vst.msk [vmem:[#allocation2 + $0x28] sm:$0xff] %vm676_vm5, %v639_v13  ;;  %1575 = vmatmul.mubr.msk.f32.gmra.mrb[8].mxu0 %vm1021_vm9, %v991_v17  ;;  %1212 = vmatprep.mubr.f32.mxu1 %v1712_v58 }
 0x13f   : > { %1164 = vmatprep.mubr.f32.mxu0 %v1712_v58 }
 0x140   : > { %v363_v23 = vpop.permute.xlu1 %362 }
 0x141   : > { %v347_v25 = vpop.permute.xlu0 %346  ;;  %397 = vst.msk [vmem:[#allocation2 + $0x70] sm:$0xff] %vm382_vm2, %v363_v23 }
 0x142   : > { %389 = vst.msk [vmem:[#allocation2 + $0x30] sm:$0xff] %vm382_vm2, %v347_v25 }
 0x144   : > { %v755_v19 = vpop.permute.xlu1 %754 }
 0x145   : > { %v739_v26 = vpop.permute.xlu0 %738  ;;  %790 = vst.msk [vmem:[#allocation2 + $0x68] sm:$0xff] %vm776_vm6, %v755_v19 }
 0x146   : > { %782 = vst.msk [vmem:[#allocation2 + $0x28] sm:$0xff] %vm776_vm6, %v739_v26 }
 0x148   : > { %v463_v27 = vpop.permute.xlu1 %462 }
 0x149   : > { %v447_v30 = vpop.permute.xlu0 %446  ;;  %497 = vst.msk [vmem:[#allocation2 + $0x70] sm:$0xff] %vm482_vm3, %v463_v27 }
 0x14a   : > { %489 = vst.msk [vmem:[#allocation2 + $0x30] sm:$0xff] %vm482_vm3, %v447_v30 }
 0x14c   : > { %v852_v4 = vpop.permute.xlu1 %851 }
 0x14d   : > { %v836_v31 = vpop.permute.xlu0 %835  ;;  %887 = vst.msk [vmem:[#allocation2 + $0x68] sm:$0xff] %vm873_vm7, %v852_v4 }
 0x14e   : > { %879 = vst.msk [vmem:[#allocation2 + $0x28] sm:$0xff] %vm873_vm7, %v836_v31 }
 0x150   : > { %v560_v14 = vpop.permute.xlu1 %559 }
 0x151   : > { %v544_v15 = vpop.permute.xlu0 %543  ;;  %594 = vst.msk [vmem:[#allocation2 + $0x70] sm:$0xff] %vm579_vm4, %v560_v14 }
 0x152   : > { %586 = vst.msk [vmem:[#allocation2 + $0x30] sm:$0xff] %vm579_vm4, %v544_v15 }
 0x154   : > { %v949_v35 = vpop.permute.xlu1 %948 }
 0x155   : > { %v933_v28 = vpop.permute.xlu0 %932  ;;  %984 = vst.msk [vmem:[#allocation2 + $0x68] sm:$0xff] %vm970_vm8, %v949_v35 }
 0x156   : > { %976 = vst.msk [vmem:[#allocation2 + $0x28] sm:$0xff] %vm970_vm8, %v933_v28 }
 0x158   : > { %v268_v29 = vpop.permute.xlu1 %267 }
 0x159   : > { %v252_v36 = vpop.permute.xlu0 %251  ;;  %301 = vst.msk [vmem:[#allocation2 + $0x78] sm:$0xff] %vm285_vm1, %v268_v29 }
 0x15a   : > { %293 = vst.msk [vmem:[#allocation2 + $0x38] sm:$0xff] %vm285_vm1, %v252_v36 }
 0x15c   : > { %v657_v3 = vpop.permute.xlu1 %656  ;;  %v1000_v34 = vld [vmem:[#allocation2 + $0x68] sm:$0xff] }
 0x15d   : > { %v641_v37 = vpop.permute.xlu0 %640  ;;  %v992_v33 = vld [vmem:[#allocation2 + $0x28] sm:$0xff]  ;;  %691 = vst.msk [vmem:[#allocation2 + $0x70] sm:$0xff] %vm676_vm5, %v657_v3  ;;  %1584 = vmatmul.mubr.msk.f32.gmra.mrb[10].mxu1 %vm1021_vm9, %v1000_v34 }
 0x15e   : > { %683 = vst.msk [vmem:[#allocation2 + $0x30] sm:$0xff] %vm676_vm5, %v641_v37  ;;  %1576 = vmatmul.mubr.msk.f32.gmra.mrb[10].mxu0 %vm1021_vm9, %v992_v33  ;;  %1218 = vmatprep.mubr.f32.mxu1 %v1712_v58 }
 0x15f   : > { %1170 = vmatprep.mubr.f32.mxu0 %v1712_v58 }
 0x160   : > { %v365_v38 = vpop.permute.xlu1 %364 }
 0x161   : > { %v349_v2 = vpop.permute.xlu0 %348  ;;  %398 = vst.msk [vmem:[#allocation2 + $0x78] sm:$0xff] %vm382_vm2, %v365_v38 }
 0x162   : > { %390 = vst.msk [vmem:[#allocation2 + $0x38] sm:$0xff] %vm382_vm2, %v349_v2 }
 0x164   : > { %v757_v39 = vpop.permute.xlu1 %756 }
 0x165   : > { %v741_v40 = vpop.permute.xlu0 %740  ;;  %791 = vst.msk [vmem:[#allocation2 + $0x70] sm:$0xff] %vm776_vm6, %v757_v39 }
 0x166   : > { %783 = vst.msk [vmem:[#allocation2 + $0x30] sm:$0xff] %vm776_vm6, %v741_v40 }
 0x168   : > { %v465_v41 = vpop.permute.xlu1 %464 }
 0x169   : > { %v449_v11 = vpop.permute.xlu0 %448  ;;  %498 = vst.msk [vmem:[#allocation2 + $0x78] sm:$0xff] %vm482_vm3, %v465_v41 }
 0x16a   : > { %490 = vst.msk [vmem:[#allocation2 + $0x38] sm:$0xff] %vm482_vm3, %v449_v11 }
 0x16c   : > { %v854_v22 = vpop.permute.xlu1 %853 }
 0x16d   : > { %v838_v42 = vpop.permute.xlu0 %837  ;;  %888 = vst.msk [vmem:[#allocation2 + $0x70] sm:$0xff] %vm873_vm7, %v854_v22 }
 0x16e   : > { %880 = vst.msk [vmem:[#allocation2 + $0x30] sm:$0xff] %vm873_vm7, %v838_v42 }
 0x170   : > { %v562_v43 = vpop.permute.xlu1 %561 }
 0x171   : > { %v546_v16 = vpop.permute.xlu0 %545  ;;  %595 = vst.msk [vmem:[#allocation2 + $0x78] sm:$0xff] %vm579_vm4, %v562_v43 }
 0x172   : > { %587 = vst.msk [vmem:[#allocation2 + $0x38] sm:$0xff] %vm579_vm4, %v546_v16 }
 0x174   : > { %v951_v44 = vpop.permute.xlu1 %950 }
 0x175   : > { %v935_v45 = vpop.permute.xlu0 %934  ;;  %985 = vst.msk [vmem:[#allocation2 + $0x70] sm:$0xff] %vm970_vm8, %v951_v44 }
 0x176   : > { %977 = vst.msk [vmem:[#allocation2 + $0x30] sm:$0xff] %vm970_vm8, %v935_v45 }
 0x178   : > { %v659_v46 = vpop.permute.xlu1 %658 }
 0x179   : > { %v643_v24 = vpop.permute.xlu0 %642  ;;  %692 = vst.msk [vmem:[#allocation2 + $0x78] sm:$0xff] %vm676_vm5, %v659_v46 }
 0x17a   : > { %684 = vst.msk [vmem:[#allocation2 + $0x38] sm:$0xff] %vm676_vm5, %v643_v24 }
 0x17c   : > { %v759_v47 = vpop.permute.xlu1 %758  ;;  %v1001_v49 = vld [vmem:[#allocation2 + $0x70] sm:$0xff] }
 0x17d   : > { %v743_v48 = vpop.permute.xlu0 %742  ;;  %v993_v32 = vld [vmem:[#allocation2 + $0x30] sm:$0xff]  ;;  %792 = vst.msk [vmem:[#allocation2 + $0x78] sm:$0xff] %vm776_vm6, %v759_v47  ;;  %1585 = vmatmul.mubr.msk.f32.gmra.mrb[12].mxu1 %vm1021_vm9, %v1001_v49 }
 0x17e   : > { %784 = vst.msk [vmem:[#allocation2 + $0x38] sm:$0xff] %vm776_vm6, %v743_v48  ;;  %1577 = vmatmul.mubr.msk.f32.gmra.mrb[12].mxu0 %vm1021_vm9, %v993_v32  ;;  %1224 = vmatprep.mubr.f32.mxu1 %v1712_v58 }
 0x17f   : > { %1176 = vmatprep.mubr.f32.mxu0 %v1712_v58 }
 0x180   : > { %v856_v50 = vpop.permute.xlu1 %855 }
 0x181   : > { %v840_v8 = vpop.permute.xlu0 %839  ;;  %889 = vst.msk [vmem:[#allocation2 + $0x78] sm:$0xff] %vm873_vm7, %v856_v50 }
 0x182   : > { %881 = vst.msk [vmem:[#allocation2 + $0x38] sm:$0xff] %vm873_vm7, %v840_v8 }
 0x184   : > { %v953_v20 = vpop.permute.xlu1 %952 }
 0x185   : > { %v937_v51 = vpop.permute.xlu0 %936  ;;  %986 = vst.msk [vmem:[#allocation2 + $0x78] sm:$0xff] %vm970_vm8, %v953_v20 }
 0x186   : > { %978 = vst.msk [vmem:[#allocation2 + $0x38] sm:$0xff] %vm970_vm8, %v937_v51 }
 0x18c   : > { %v1002_v52 = vld [vmem:[#allocation2 + $0x78] sm:$0xff] }
 0x18d   : > { %v994_v56 = vld [vmem:[#allocation2 + $0x38] sm:$0xff]  ;;  %1586 = vmatmul.mubr.msk.f32.gmra.mrb[14].mxu1 %vm1021_vm9, %v1002_v52 }
 0x18e   : > { %1578 = vmatmul.mubr.msk.f32.gmra.mrb[14].mxu0 %vm1021_vm9, %v994_v56 }
 0x190   : > { %v1184_v21 = vpop.f32.mrb[0].mxu1 }
 0x191   : > { %v1136_v58 = vpop.f32.mrb[0].mxu0  ;;  %vm1239_vm11 = vcmp.ge.f32.partialorder %v1184_v21, 0.0  ;;  %v1255_v54 = vmul.f32 0.01, %v1184_v21  ;;  %v1186_v55 = vpop.f32.mrb[1].mxu1 }
 0x192   : > { %vm1231_vm10 = vcmp.ge.f32.partialorder %v1136_v58, 0.0  ;;  %v1247_v53 = vmul.f32 0.01, %v1136_v58  ;;  %v1138_v61 = vpop.f32.mrb[1].mxu0  ;;  %vm1287_vm13 = vcmp.ge.f32.partialorder %v1186_v55, 0.0 }
 0x193   : > { %vm1279_vm12 = vcmp.ge.f32.partialorder %v1138_v61, 0.0  ;;  %v1295_v59 = vmul.f32 0.01, %v1138_v61  ;;  %v1271_v60 = vsel %vm1239_vm11, %v1184_v21, %v1255_v54  ;;  %v1303_v62 = vmul.f32 0.01, %v1186_v55 }
 0x194   : > { %v1263_v57 = vsel %vm1231_vm10, %v1136_v58, %v1247_v53 }
 0x195   : > { %v1311_v63 = vsel %vm1279_vm12, %v1138_v61, %v1295_v59  ;;  %v1319_v1 = vsel %vm1287_vm13, %v1186_v55, %v1303_v62 }
 0x196   : > { %v1327_v0 = vadd.f32 %v1311_v63, %v1263_v57  ;;  %v1335_v5 = vadd.f32 %v1319_v1, %v1271_v60 }
 0x198   : > { %1343 = vst [vmem:[%s2399_s6] sm:$0xff] %v1327_v0  ;;  %1351 = vst [vmem:[%s2399_s6 + $0x40] sm:$0xff] %v1335_v5 }
 0x1b0   : > { %v1190_v7 = vpop.f32.mrb[2].mxu1 }
 0x1b1   : > { %v1142_v6 = vpop.f32.mrb[2].mxu0  ;;  %vm1240_vm15 = vcmp.ge.f32.partialorder %v1190_v7, 0.0  ;;  %v1256_v9 = vmul.f32 0.01, %v1190_v7  ;;  %v1192_v13 = vpop.f32.mrb[3].mxu1 }
 0x1b2   : > { %vm1232_vm14 = vcmp.ge.f32.partialorder %v1142_v6, 0.0  ;;  %v1248_v12 = vmul.f32 0.01, %v1142_v6  ;;  %v1144_v10 = vpop.f32.mrb[3].mxu0  ;;  %vm1288_vm1 = vcmp.ge.f32.partialorder %v1192_v13, 0.0 }
 0x1b3   : > { %vm1280_vm0 = vcmp.ge.f32.partialorder %v1144_v10, 0.0  ;;  %v1296_v18 = vmul.f32 0.01, %v1144_v10  ;;  %v1272_v23 = vsel %vm1240_vm15, %v1190_v7, %v1256_v9  ;;  %v1304_v25 = vmul.f32 0.01, %v1192_v13 }
 0x1b4   : > { %v1264_v17 = vsel %vm1232_vm14, %v1142_v6, %v1248_v12 }
 0x1b5   : > { %v1312_v19 = vsel %vm1280_vm0, %v1144_v10, %v1296_v18  ;;  %v1320_v27 = vsel %vm1288_vm1, %v1192_v13, %v1304_v25 }
 0x1b6   : > { %v1328_v26 = vadd.f32 %v1312_v19, %v1264_v17  ;;  %v1336_v30 = vadd.f32 %v1320_v27, %v1272_v23 }
 0x1b8   : > { %1344 = vst [vmem:[%s2399_s6 + $0x8] sm:$0xff] %v1328_v26  ;;  %1352 = vst [vmem:[%s2399_s6 + $0x48] sm:$0xff] %v1336_v30 }
 0x1d0   : > { %v1196_v31 = vpop.f32.mrb[4].mxu1 }
 0x1d1   : > { %v1148_v4 = vpop.f32.mrb[4].mxu0  ;;  %vm1241_vm3 = vcmp.ge.f32.partialorder %v1196_v31, 0.0  ;;  %v1257_v15 = vmul.f32 0.01, %v1196_v31  ;;  %v1198_v28 = vpop.f32.mrb[5].mxu1 }
 0x1d2   : > { %vm1233_vm2 = vcmp.ge.f32.partialorder %v1148_v4, 0.0  ;;  %v1249_v14 = vmul.f32 0.01, %v1148_v4  ;;  %v1150_v35 = vpop.f32.mrb[5].mxu0  ;;  %vm1289_vm5 = vcmp.ge.f32.partialorder %v1198_v28, 0.0 }
 0x1d3   : > { %vm1281_vm4 = vcmp.ge.f32.partialorder %v1150_v35, 0.0  ;;  %v1297_v36 = vmul.f32 0.01, %v1150_v35  ;;  %v1273_v3 = vsel %vm1241_vm3, %v1196_v31, %v1257_v15  ;;  %v1305_v37 = vmul.f32 0.01, %v1198_v28 }
 0x1d4   : > { %v1265_v29 = vsel %vm1233_vm2, %v1148_v4, %v1249_v14 }
 0x1d5   : > { %v1313_v33 = vsel %vm1281_vm4, %v1150_v35, %v1297_v36  ;;  %v1321_v38 = vsel %vm1289_vm5, %v1198_v28, %v1305_v37 }
 0x1d6   : > { %v1329_v34 = vadd.f32 %v1313_v33, %v1265_v29  ;;  %v1337_v2 = vadd.f32 %v1321_v38, %v1273_v3 }
 0x1d8   : > { %1345 = vst [vmem:[%s2399_s6 + $0x10] sm:$0xff] %v1329_v34  ;;  %1353 = vst [vmem:[%s2399_s6 + $0x50] sm:$0xff] %v1337_v2 }
 0x1f0   : > { %v1202_v40 = vpop.f32.mrb[6].mxu1 }
 0x1f1   : > { %v1154_v39 = vpop.f32.mrb[6].mxu0  ;;  %vm1242_vm7 = vcmp.ge.f32.partialorder %v1202_v40, 0.0  ;;  %v1258_v11 = vmul.f32 0.01, %v1202_v40  ;;  %v1204_v42 = vpop.f32.mrb[7].mxu1 }
 0x1f2   : > { %vm1234_vm6 = vcmp.ge.f32.partialorder %v1154_v39, 0.0  ;;  %v1250_v41 = vmul.f32 0.01, %v1154_v39  ;;  %v1156_v22 = vpop.f32.mrb[7].mxu0  ;;  %vm1290_vm9 = vcmp.ge.f32.partialorder %v1204_v42, 0.0 }
 0x1f3   : > { %vm1282_vm8 = vcmp.ge.f32.partialorder %v1156_v22, 0.0  ;;  %v1298_v16 = vmul.f32 0.01, %v1156_v22  ;;  %v1274_v44 = vsel %vm1242_vm7, %v1202_v40, %v1258_v11  ;;  %v1306_v45 = vmul.f32 0.01, %v1204_v42 }
 0x1f4   : > { %v1266_v43 = vsel %vm1234_vm6, %v1154_v39, %v1250_v41 }
 0x1f5   : > { %v1314_v46 = vsel %vm1282_vm8, %v1156_v22, %v1298_v16  ;;  %v1322_v47 = vsel %vm1290_vm9, %v1204_v42, %v1306_v45 }
 0x1f6   : > { %v1330_v24 = vadd.f32 %v1314_v46, %v1266_v43  ;;  %v1338_v48 = vadd.f32 %v1322_v47, %v1274_v44 }
 0x1f8   : > { %1346 = vst [vmem:[%s2399_s6 + $0x18] sm:$0xff] %v1330_v24  ;;  %1354 = vst [vmem:[%s2399_s6 + $0x58] sm:$0xff] %v1338_v48 }
 0x210   : > { %v1208_v49 = vpop.f32.mrb[8].mxu1 }
 0x211   : > { %v1160_v32 = vpop.f32.mrb[8].mxu0  ;;  %vm1243_vm11 = vcmp.ge.f32.partialorder %v1208_v49, 0.0  ;;  %v1259_v8 = vmul.f32 0.01, %v1208_v49  ;;  %v1210_v51 = vpop.f32.mrb[9].mxu1 }
 0x212   : > { %vm1235_vm10 = vcmp.ge.f32.partialorder %v1160_v32, 0.0  ;;  %v1251_v50 = vmul.f32 0.01, %v1160_v32  ;;  %v1162_v20 = vpop.f32.mrb[9].mxu0  ;;  %vm1291_vm13 = vcmp.ge.f32.partialorder %v1210_v51, 0.0 }
 0x213   : > { %vm1283_vm12 = vcmp.ge.f32.partialorder %v1162_v20, 0.0  ;;  %v1299_v52 = vmul.f32 0.01, %v1162_v20  ;;  %v1275_v58 = vsel %vm1243_vm11, %v1208_v49, %v1259_v8  ;;  %v1307_v21 = vmul.f32 0.01, %v1210_v51 }
 0x214   : > { %v1267_v56 = vsel %vm1235_vm10, %v1160_v32, %v1251_v50 }
 0x215   : > { %v1315_v53 = vsel %vm1283_vm12, %v1162_v20, %v1299_v52  ;;  %v1323_v61 = vsel %vm1291_vm13, %v1210_v51, %v1307_v21 }
 0x216   : > { %v1331_v54 = vadd.f32 %v1315_v53, %v1267_v56  ;;  %v1339_v55 = vadd.f32 %v1323_v61, %v1275_v58 }
 0x218   : > { %1347 = vst [vmem:[%s2399_s6 + $0x20] sm:$0xff] %v1331_v54  ;;  %1355 = vst [vmem:[%s2399_s6 + $0x60] sm:$0xff] %v1339_v55 }
 0x230   : > { %v1214_v59 = vpop.f32.mrb[10].mxu1 }
 0x231   : > { %v1166_v57 = vpop.f32.mrb[10].mxu0  ;;  %vm1244_vm15 = vcmp.ge.f32.partialorder %v1214_v59, 0.0  ;;  %v1260_v62 = vmul.f32 0.01, %v1214_v59  ;;  %v1216_v0 = vpop.f32.mrb[11].mxu1 }
 0x232   : > { %vm1236_vm14 = vcmp.ge.f32.partialorder %v1166_v57, 0.0  ;;  %v1252_v60 = vmul.f32 0.01, %v1166_v57  ;;  %v1168_v63 = vpop.f32.mrb[11].mxu0  ;;  %vm1292_vm1 = vcmp.ge.f32.partialorder %v1216_v0, 0.0 }
 0x233   : > { %vm1284_vm0 = vcmp.ge.f32.partialorder %v1168_v63, 0.0  ;;  %v1300_v5 = vmul.f32 0.01, %v1168_v63  ;;  %v1276_v6 = vsel %vm1244_vm15, %v1214_v59, %v1260_v62  ;;  %v1308_v7 = vmul.f32 0.01, %v1216_v0 }
 0x234   : > { %v1268_v1 = vsel %vm1236_vm14, %v1166_v57, %v1252_v60 }
 0x235   : > { %v1316_v12 = vsel %vm1284_vm0, %v1168_v63, %v1300_v5  ;;  %v1324_v10 = vsel %vm1292_vm1, %v1216_v0, %v1308_v7 }
 0x236   : > { %v1332_v9 = vadd.f32 %v1316_v12, %v1268_v1  ;;  %v1340_v13 = vadd.f32 %v1324_v10, %v1276_v6 }
 0x238   : > { %1348 = vst [vmem:[%s2399_s6 + $0x28] sm:$0xff] %v1332_v9  ;;  %1356 = vst [vmem:[%s2399_s6 + $0x68] sm:$0xff] %v1340_v13 }
 0x250   : > { %v1220_v18 = vpop.f32.mrb[12].mxu1 }
 0x251   : > { %v1172_v17 = vpop.f32.mrb[12].mxu0  ;;  %vm1245_vm3 = vcmp.ge.f32.partialorder %v1220_v18, 0.0  ;;  %v1261_v25 = vmul.f32 0.01, %v1220_v18  ;;  %v1222_v26 = vpop.f32.mrb[13].mxu1 }
 0x252   : > { %vm1237_vm2 = vcmp.ge.f32.partialorder %v1172_v17, 0.0  ;;  %v1253_v23 = vmul.f32 0.01, %v1172_v17  ;;  %v1174_v19 = vpop.f32.mrb[13].mxu0  ;;  %vm1293_vm5 = vcmp.ge.f32.partialorder %v1222_v26, 0.0 }
 0x253   : > { %vm1285_vm4 = vcmp.ge.f32.partialorder %v1174_v19, 0.0  ;;  %v1301_v30 = vmul.f32 0.01, %v1174_v19  ;;  %v1277_v4 = vsel %vm1245_vm3, %v1220_v18, %v1261_v25  ;;  %v1309_v31 = vmul.f32 0.01, %v1222_v26 }
 0x254   : > { %v1269_v27 = vsel %vm1237_vm2, %v1172_v17, %v1253_v23 }
 0x255   : > { %v1317_v14 = vsel %vm1285_vm4, %v1174_v19, %v1301_v30  ;;  %v1325_v35 = vsel %vm1293_vm5, %v1222_v26, %v1309_v31 }
 0x256   : > { %v1333_v15 = vadd.f32 %v1317_v14, %v1269_v27  ;;  %v1341_v28 = vadd.f32 %v1325_v35, %v1277_v4 }
 0x258   : > { %1349 = vst [vmem:[%s2399_s6 + $0x30] sm:$0xff] %v1333_v15  ;;  %1357 = vst [vmem:[%s2399_s6 + $0x70] sm:$0xff] %v1341_v28 }
 0x260   : > { %v1226_v36 = vpop.f32.mrb[14].mxu1 }
 0x261   : > { %v1178_v29 = vpop.f32.mrb[14].mxu0  ;;  %vm1246_vm7 = vcmp.ge.f32.partialorder %v1226_v36, 0.0  ;;  %v1262_v37 = vmul.f32 0.01, %v1226_v36  ;;  %v1228_v34 = vpop.f32.mrb[15].mxu1 }
 0x262   : > { %vm1238_vm6 = vcmp.ge.f32.partialorder %v1178_v29, 0.0  ;;  %v1254_v3 = vmul.f32 0.01, %v1178_v29  ;;  %v1180_v33 = vpop.f32.mrb[15].mxu0  ;;  %vm1294_vm9 = vcmp.ge.f32.partialorder %v1228_v34, 0.0 }
 0x263   : > { %vm1286_vm8 = vcmp.ge.f32.partialorder %v1180_v33, 0.0  ;;  %v1302_v2 = vmul.f32 0.01, %v1180_v33  ;;  %v1278_v39 = vsel %vm1246_vm7, %v1226_v36, %v1262_v37  ;;  %v1310_v40 = vmul.f32 0.01, %v1228_v34 }
 0x264   : > { %v1270_v38 = vsel %vm1238_vm6, %v1178_v29, %v1254_v3 }
 0x265   : > { %v1318_v41 = vsel %vm1286_vm8, %v1180_v33, %v1302_v2  ;;  %v1326_v22 = vsel %vm1294_vm9, %v1228_v34, %v1310_v40 }
 0x266   : > { %v1334_v11 = vadd.f32 %v1318_v41, %v1270_v38  ;;  %v1342_v42 = vadd.f32 %v1326_v22, %v1278_v39 }
 0x268   : > { %1350 = vst [vmem:[%s2399_s6 + $0x38] sm:$0xff] %v1334_v11  ;;  %1358 = vst [vmem:[%s2399_s6 + $0x78] sm:$0xff] %v1342_v42 }
 0x269 PF: > { %s12_s13 = sadd.s32 1, %s1703_s13   ;;  %s2435_s9 = smov %s1695_s11 }
 0x26a   : > { %p9_p7 = scmp.ge.s32.totalorder %s12_s13, 18   ;;  %s2436_s10 = smov %s1699_s12 }
 0x26b   : > { %s2437_s11 = smov %s2440_s14  ;;  %s2438_s12 = smov %s2444_s15 }
 0x26c   :  { %11 = sbr.rel (!%p9_p7) target bundleno = 3 (0x3), region = 61 }

</bundles_post_ra>
